<compile_context>
chip_gen: v5e
topology: v5e:2x2
jax: 0.10.0
libtpu: 0.0.40
codegen_flags: <defaults>
</compile_context>

<pallas_src>
import functools
import math

import jax
import jax.numpy as jnp
from jax import lax
from jax.experimental import pallas as pl
from jax.experimental.pallas import tpu as pltpu


CFG = dict(
    vocab_size=100,
    hidden=32,
    heads=4,
    layers=2,
    intermediate=64,
    max_pos=16,
    type_vocab=2,
    num_labels=3,
)

# Row indices inside the packed per-layer vector tensor `layer_vecs` (L, 8, 3H).
_QKV_B, _O_B, _LN1_G, _LN1_B, _FF1_B, _FF2_B, _LN2_G, _LN2_B = range(8)
# Row indices inside the packed global vector tensor `glob_vecs` (4, H).
_EMB_LN_G, _EMB_LN_B, _POOL_B, _CLS_B = range(4)


# ----------------------------------------------------------------------------
# Fused forward-pass kernel (runs once; batch folded into the row dimension)
# ----------------------------------------------------------------------------
def _fused_bert_kernel(x_ref, pt_ref, mask_ref,
                       qkvw_ref, ow_ref, f1w_ref, f2w_ref,
                       lvec_ref, gvec_ref, pw_ref, cw_ref, out_ref,
                       *, num_layers, num_heads, eps):
    B, S, H = x_ref.shape
    F = f1w_ref.shape[2]          # intermediate size
    NL = cw_ref.shape[1]          # num labels
    D = H // num_heads
    BS = B * S
    scale = 1.0 / math.sqrt(D)

    def layer_norm(v, g, b):
        mu = jnp.mean(v, axis=-1, keepdims=True)
        var = jnp.mean(jnp.square(v - mu), axis=-1, keepdims=True)
        return (v - mu) * lax.rsqrt(var + eps) * g + b

    def gelu_tanh(v):
        # TODO(synk): HF/PyTorch BERT default is exact erf GELU; tanh
        # approximation used for guaranteed Mosaic lowering (tiny divergence).
        c = math.sqrt(2.0 / math.pi)
        return 0.5 * v * (1.0 + jnp.tanh(c * (v + 0.044715 * v * v * v)))

    # --- embeddings (word + position + token-type-0) + LayerNorm -------------
    x = x_ref[...] + pt_ref[...]                                  # (B, S, H)
    x = layer_norm(x.reshape(BS, H),
                   gvec_ref[_EMB_LN_G:_EMB_LN_G + 1, :],
                   gvec_ref[_EMB_LN_B:_EMB_LN_B + 1, :])          # (BS, H) f32
    mask = mask_ref[...]                                          # (B, 1, S)

    # --- transformer encoder layers (statically unrolled, weights in VMEM) ---
    for l in range(num_layers):
        # fused QKV projection for all B*S rows: one 96-lane-wide MXU push
        qkv = (jnp.dot(x.astype(jnp.bfloat16), qkvw_ref[l],
                       preferred_element_type=jnp.float32)
               + lvec_ref[l, _QKV_B:_QKV_B + 1, :])               # (BS, 3H)
        qkv = qkv.reshape(B, S, 3 * H)

        # multi-head attention: heads unrolled, each matmul batched over B
        ctx_heads = []
        for h in range(num_heads):
            q = qkv[:, :, h * D:(h + 1) * D]                      # (B, S, D)
            k = qkv[:, :, H + h * D:H + (h + 1) * D]              # (B, S, D)
            v = qkv[:, :, 2 * H + h * D:2 * H + (h + 1) * D]      # (B, S, D)
            s = jnp.einsum('bqd,bkd->bqk', q, k,
                           preferred_element_type=jnp.float32)
            s = s * scale + mask                                  # (B, S, S)
            s = s - jnp.max(s, axis=-1, keepdims=True)
            p = jnp.exp(s)
            p = p * pl.reciprocal(jnp.sum(p, axis=-1, keepdims=True),
                                  approx=True)
            ctx_heads.append(jnp.einsum('bqk,bkd->bqd', p, v,
                                        preferred_element_type=jnp.float32))
        ctx = jnp.concatenate(ctx_heads, axis=-1).reshape(BS, H)  # (BS, H)

        attn = (jnp.dot(ctx.astype(jnp.bfloat16), ow_ref[l],
                        preferred_element_type=jnp.float32)
                + lvec_ref[l, _O_B:_O_B + 1, :H])
        x = layer_norm(x + attn,                                  # residual
                       lvec_ref[l, _LN1_G:_LN1_G + 1, :H],
                       lvec_ref[l, _LN1_B:_LN1_B + 1, :H])

        ff = (jnp.dot(x.astype(jnp.bfloat16), f1w_ref[l],
                      preferred_element_type=jnp.float32)
              + lvec_ref[l, _FF1_B:_FF1_B + 1, :F])
        ff = gelu_tanh(ff)
        ff = (jnp.dot(ff.astype(jnp.bfloat16), f2w_ref[l],
                      preferred_element_type=jnp.float32)
              + lvec_ref[l, _FF2_B:_FF2_B + 1, :H])
        x = layer_norm(x + ff,                                    # residual
                       lvec_ref[l, _LN2_G:_LN2_G + 1, :H],
                       lvec_ref[l, _LN2_B:_LN2_B + 1, :H])

    # --- pooler + classifier for all batch rows at once -----------------------
    cls = x.reshape(B, S, H)[:, 0:1, :].reshape(B, H)             # CLS rows
    pooled = jnp.tanh(jnp.dot(cls.astype(jnp.bfloat16), pw_ref[...],
                              preferred_element_type=jnp.float32)
                      + gvec_ref[_POOL_B:_POOL_B + 1, :])
    # dropout: identity in eval mode (matching reference eval semantics)
    logits = (jnp.dot(pooled.astype(jnp.bfloat16), cw_ref[...],
                      preferred_element_type=jnp.float32)
              + gvec_ref[_CLS_B:_CLS_B + 1, :NL])
    out_ref[...] = logits.astype(out_ref.dtype)                   # one store


# ----------------------------------------------------------------------------
# Parameter init (deterministic synthetic weights; per-layer weight matrices
# stacked over a leading layer axis; all small bias/LN vectors coalesced into
# two packed tensors so the kernel takes 11 refs instead of 22)
# ----------------------------------------------------------------------------
def init_params(key, cfg):
    H, I, L = cfg["hidden"], cfg["intermediate"], cfg["layers"]
    NL = cfg["num_labels"]
    W = 3 * H                                # packed per-layer vector width
    keys = iter(jax.random.split(key, 9))

    def dense(k, *shape):
        return 0.02 * jax.random.normal(k, shape, jnp.float32)

    # raw per-layer vectors (fresh-init values: biases 0, LN gammas 1)
    qkv_b = jnp.zeros((L, 3 * H), jnp.float32)
    o_b = jnp.zeros((L, H), jnp.float32)
    ln1_g = jnp.ones((L, H), jnp.float32)
    ln1_b = jnp.zeros((L, H), jnp.float32)
    ff1_b = jnp.zeros((L, I), jnp.float32)
    ff2_b = jnp.zeros((L, H), jnp.float32)
    ln2_g = jnp.ones((L, H), jnp.float32)
    ln2_b = jnp.zeros((L, H), jnp.float32)

    def pad_row(v):  # (L, w) -> (L, 1, W) zero-padded on the lane axis
        return jnp.pad(v, ((0, 0), (0, W - v.shape[-1])))[:, None, :]

    layer_vecs = jnp.concatenate(
        [pad_row(qkv_b), pad_row(o_b), pad_row(ln1_g), pad_row(ln1_b),
         pad_row(ff1_b), pad_row(ff2_b), pad_row(ln2_g), pad_row(ln2_b)],
        axis=1)                                                   # (L, 8, 3H)

    glob_vecs = jnp.stack([
        jnp.ones((H,), jnp.float32),    # embedding LN gamma
        jnp.zeros((H,), jnp.float32),   # embedding LN beta
        jnp.zeros((H,), jnp.float32),   # pooler bias
        jnp.zeros((H,), jnp.float32),   # classifier bias (first NL lanes used)
    ])                                                            # (4, H)

    return {
        "word_emb": dense(next(keys), cfg["vocab_size"], H),
        "pos_emb": dense(next(keys), cfg["max_pos"], H),
        "type_emb": dense(next(keys), cfg["type_vocab"], H),
        # MXU operands in bf16 (f32 accumulation inside the kernel)
        "qkv_w": dense(next(keys), L, H, 3 * H).astype(jnp.bfloat16),
        "o_w": dense(next(keys), L, H, H).astype(jnp.bfloat16),
        "ff1_w": dense(next(keys), L, H, I).astype(jnp.bfloat16),
        "ff2_w": dense(next(keys), L, I, H).astype(jnp.bfloat16),
        "pool_w": dense(next(keys), H, H).astype(jnp.bfloat16),
        "cls_w": dense(next(keys), H, NL).astype(jnp.bfloat16),
        "layer_vecs": layer_vecs,
        "glob_vecs": glob_vecs,
    }


# ----------------------------------------------------------------------------
# Wrapper: one gridless pallas_call for the whole forward pass
# ----------------------------------------------------------------------------
def custom_model_forward(params, input_ids, attention_mask, cfg):
    B, S = input_ids.shape
    H, nH, L = cfg["hidden"], cfg["heads"], cfg["layers"]
    NL = cfg["num_labels"]

    # Glue outside the kernel (cheap, done once per call):
    # TODO(synk): the embedding-table gather stays in the wrapper — a
    # data-dependent integer gather has no efficient Pallas TPU equivalent
    # at this size.
    x_word = jnp.take(params["word_emb"], input_ids, axis=0)         # (B,S,H)
    # token_type_ids are implicitly all-zero in the reference forward()
    pos_type = params["pos_emb"][:S] + params["type_emb"][0:1]        # (S,H)
    ext_mask = ((1.0 - attention_mask.astype(jnp.float32)) * -1e4
                ).reshape(B, 1, S)                                    # (B,1,S)

    kernel = functools.partial(_fused_bert_kernel,
                               num_layers=L, num_heads=nH, eps=1e-12)
    vmem = lambda: pl.BlockSpec(memory_space=pltpu.MemorySpace.VMEM)

    logits = pl.pallas_call(
        kernel,
        out_shape=jax.ShapeDtypeStruct((B, NL), jnp.float32),
        in_specs=[vmem() for _ in range(11)],
        out_specs=vmem(),
    )(x_word, pos_type, ext_mask,
      params["qkv_w"], params["o_w"], params["ff1_w"], params["ff2_w"],
      params["layer_vecs"], params["glob_vecs"],
      params["pool_w"], params["cls_w"])

    return logits


# ----------------------------------------------------------------------------
if __name__ == "__main__":
    key = jax.random.PRNGKey(0)
    pkey, ikey = jax.random.split(key)

    params = init_params(pkey, CFG)

    B, S = 2, 8
    input_ids = jax.random.randint(ikey, (B, S), 0, CFG["vocab_size"],
                                   dtype=jnp.int32)
    attention_mask = jnp.ones((B, S), dtype=jnp.int32)
    attention_mask = attention_mask.at[1, 6:].set(0)   # ragged example

    fwd = jax.jit(functools.partial(custom_model_forward, cfg=CFG))
    logits = fwd(params, input_ids, attention_mask)
    jax.block_until_ready(logits)
    assert logits.shape == (B, CFG["num_labels"])
    print("KERNEL_OK")
</pallas_src>

<mosaic_0001>
module attributes {stable_mosaic.version = 11 : i64} {
  func.func @_fused_bert_kernel(%arg0: memref<2x8x32xf32, #tpu.memory_space<vmem>>, %arg1: memref<8x32xf32, #tpu.memory_space<vmem>>, %arg2: memref<2x1x8xf32, #tpu.memory_space<vmem>>, %arg3: memref<2x32x96xbf16, #tpu.memory_space<vmem>>, %arg4: memref<2x32x32xbf16, #tpu.memory_space<vmem>>, %arg5: memref<2x32x64xbf16, #tpu.memory_space<vmem>>, %arg6: memref<2x64x32xbf16, #tpu.memory_space<vmem>>, %arg7: memref<2x8x96xf32, #tpu.memory_space<vmem>>, %arg8: memref<4x32xf32, #tpu.memory_space<vmem>>, %arg9: memref<32x32xbf16, #tpu.memory_space<vmem>>, %arg10: memref<32x3xbf16, #tpu.memory_space<vmem>>, %arg11: memref<2x3xf32, #tpu.memory_space<vmem>>) attributes {dimension_semantics = [], scalar_prefetch = 0 : i64, scratch_operands = 0 : i64, tpu.core_type = #tpu.core_type<tc>} {
    %c0 = arith.constant 0 : index
    %c0_0 = arith.constant 0 : index
    %c0_1 = arith.constant 0 : index
    %0 = vector.load %arg0[%c0, %c0_0, %c0_1] : memref<2x8x32xf32, #tpu.memory_space<vmem>>, vector<2x8x32xf32>
    %c0_2 = arith.constant 0 : index
    %c0_3 = arith.constant 0 : index
    %1 = vector.load %arg1[%c0_2, %c0_3] : memref<8x32xf32, #tpu.memory_space<vmem>>, vector<8x32xf32>
    %2 = vector.shape_cast %1 : vector<8x32xf32> to vector<1x8x32xf32>
    %3 = vector.broadcast %2 : vector<1x8x32xf32> to vector<2x8x32xf32>
    %4 = arith.addf %0, %3 : vector<2x8x32xf32>
    %5 = vector.shape_cast %4 : vector<2x8x32xf32> to vector<16x32xf32>
    %c0_4 = arith.constant 0 : index
    %c0_5 = arith.constant 0 : index
    %6 = vector.load %arg8[%c0_4, %c0_5] : memref<4x32xf32, #tpu.memory_space<vmem>>, vector<1x32xf32>
    %c1 = arith.constant 1 : index
    %c0_6 = arith.constant 0 : index
    %7 = vector.load %arg8[%c1, %c0_6] : memref<4x32xf32, #tpu.memory_space<vmem>>, vector<1x32xf32>
    %cst = arith.constant dense<0.000000e+00> : vector<16xf32>
    %8 = vector.multi_reduction <add>, %5, %cst [1] : vector<16x32xf32> to vector<16xf32>
    %9 = vector.shape_cast %8 : vector<16xf32> to vector<16x1xf32>
    %cst_7 = arith.constant 3.200000e+01 : f32
    %10 = vector.broadcast %cst_7 : f32 to vector<16x1xf32>
    %11 = arith.divf %9, %10 : vector<16x1xf32>
    %12 = vector.broadcast %11 : vector<16x1xf32> to vector<16x32xf32>
    %13 = arith.subf %5, %12 : vector<16x32xf32>
    %14 = arith.mulf %13, %13 : vector<16x32xf32>
    %cst_8 = arith.constant dense<0.000000e+00> : vector<16xf32>
    %15 = vector.multi_reduction <add>, %14, %cst_8 [1] : vector<16x32xf32> to vector<16xf32>
    %16 = vector.shape_cast %15 : vector<16xf32> to vector<16x1xf32>
    %cst_9 = arith.constant 3.200000e+01 : f32
    %17 = vector.broadcast %cst_9 : f32 to vector<16x1xf32>
    %18 = arith.divf %16, %17 : vector<16x1xf32>
    %19 = vector.broadcast %11 : vector<16x1xf32> to vector<16x32xf32>
    %20 = arith.subf %5, %19 : vector<16x32xf32>
    %cst_10 = arith.constant 9.99999996E-13 : f32
    %21 = vector.broadcast %cst_10 : f32 to vector<16x1xf32>
    %22 = arith.addf %18, %21 : vector<16x1xf32>
    %23 = math.rsqrt %22 : vector<16x1xf32>
    %24 = vector.broadcast %23 : vector<16x1xf32> to vector<16x32xf32>
    %25 = arith.mulf %20, %24 : vector<16x32xf32>
    %26 = vector.broadcast %6 : vector<1x32xf32> to vector<16x32xf32>
    %27 = arith.mulf %25, %26 : vector<16x32xf32>
    %28 = vector.broadcast %7 : vector<1x32xf32> to vector<16x32xf32>
    %29 = arith.addf %27, %28 : vector<16x32xf32>
    %c0_11 = arith.constant 0 : index
    %c0_12 = arith.constant 0 : index
    %c0_13 = arith.constant 0 : index
    %30 = vector.load %arg2[%c0_11, %c0_12, %c0_13] : memref<2x1x8xf32, #tpu.memory_space<vmem>>, vector<2x1x8xf32>
    %31 = arith.truncf %29 : vector<16x32xf32> to vector<16x32xbf16>
    %c0_14 = arith.constant 0 : index
    %c0_15 = arith.constant 0 : index
    %c0_16 = arith.constant 0 : index
    %32 = vector.load %arg3[%c0_14, %c0_15, %c0_16] : memref<2x32x96xbf16, #tpu.memory_space<vmem>>, vector<1x32x96xbf16>
    %33 = vector.shape_cast %32 : vector<1x32x96xbf16> to vector<32x96xbf16>
    %cst_17 = arith.constant dense<0.000000e+00> : vector<16x96xf32>
    %34 = tpu.matmul %31, %33, %cst_17 {dimension_numbers = #tpu.dot_dimension_numbers<[1], [0], [0], [1], [0, 0, 1, 1], [], []>} : vector<16x32xbf16>, vector<32x96xbf16>, vector<16x96xf32> -> vector<16x96xf32>
    %c0_18 = arith.constant 0 : index
    %c0_19 = arith.constant 0 : index
    %c0_20 = arith.constant 0 : index
    %35 = vector.load %arg7[%c0_18, %c0_19, %c0_20] : memref<2x8x96xf32, #tpu.memory_space<vmem>>, vector<1x1x96xf32>
    %36 = vector.shape_cast %35 : vector<1x1x96xf32> to vector<1x96xf32>
    %37 = vector.broadcast %36 : vector<1x96xf32> to vector<16x96xf32>
    %38 = arith.addf %34, %37 : vector<16x96xf32>
    %39 = vector.shape_cast %38 : vector<16x96xf32> to vector<2x8x96xf32>
    %40 = vector.extract_strided_slice %39 {offsets = [0, 0, 0], sizes = [2, 8, 8], strides = [1, 1, 1]} : vector<2x8x96xf32> to vector<2x8x8xf32>
    %41 = vector.extract_strided_slice %39 {offsets = [0, 0, 32], sizes = [2, 8, 8], strides = [1, 1, 1]} : vector<2x8x96xf32> to vector<2x8x8xf32>
    %42 = vector.extract_strided_slice %39 {offsets = [0, 0, 64], sizes = [2, 8, 8], strides = [1, 1, 1]} : vector<2x8x96xf32> to vector<2x8x8xf32>
    "tpu.trace_start"() <{level = 10 : i32, message = "bqd,bkd->bqk"}> : () -> ()
    %cst_21 = arith.constant dense<0.000000e+00> : vector<2x8x8xf32>
    %43 = tpu.matmul %40, %41, %cst_21 {dimension_numbers = #tpu.dot_dimension_numbers<[2], [2], [1], [1], [0, 0, 0, 1, 1, 1], [0], [0]>} : vector<2x8x8xf32>, vector<2x8x8xf32>, vector<2x8x8xf32> -> vector<2x8x8xf32>
    "tpu.trace_stop"() : () -> ()
    %cst_22 = arith.constant 0.353553385 : f32
    %44 = vector.broadcast %cst_22 : f32 to vector<2x8x8xf32>
    %45 = arith.mulf %43, %44 : vector<2x8x8xf32>
    %46 = vector.broadcast %30 : vector<2x1x8xf32> to vector<2x8x8xf32>
    %47 = arith.addf %45, %46 : vector<2x8x8xf32>
    %cst_23 = arith.constant dense<0xFF800000> : vector<2x8xf32>
    %48 = vector.multi_reduction <maximumf>, %47, %cst_23 [2] : vector<2x8x8xf32> to vector<2x8xf32>
    %49 = vector.shape_cast %48 : vector<2x8xf32> to vector<2x8x1xf32>
    %50 = vector.broadcast %49 : vector<2x8x1xf32> to vector<2x8x8xf32>
    %51 = arith.subf %47, %50 : vector<2x8x8xf32>
    %52 = math.exp %51 : vector<2x8x8xf32>
    %cst_24 = arith.constant dense<0.000000e+00> : vector<2x8xf32>
    %53 = vector.multi_reduction <add>, %52, %cst_24 [2] : vector<2x8x8xf32> to vector<2x8xf32>
    %54 = vector.shape_cast %53 : vector<2x8xf32> to vector<2x8x1xf32>
    %55 = tpu.reciprocal %54 {approx = true} : vector<2x8x1xf32> -> vector<2x8x1xf32>
    %56 = vector.broadcast %55 : vector<2x8x1xf32> to vector<2x8x8xf32>
    %57 = arith.mulf %52, %56 : vector<2x8x8xf32>
    "tpu.trace_start"() <{level = 10 : i32, message = "bqk,bkd->bqd"}> : () -> ()
    %cst_25 = arith.constant dense<0.000000e+00> : vector<2x8x8xf32>
    %58 = tpu.matmul %57, %42, %cst_25 {dimension_numbers = #tpu.dot_dimension_numbers<[2], [1], [1], [2], [0, 0, 0, 1, 1, 2], [0], [0]>} : vector<2x8x8xf32>, vector<2x8x8xf32>, vector<2x8x8xf32> -> vector<2x8x8xf32>
    "tpu.trace_stop"() : () -> ()
    %59 = vector.extract_strided_slice %39 {offsets = [0, 0, 8], sizes = [2, 8, 8], strides = [1, 1, 1]} : vector<2x8x96xf32> to vector<2x8x8xf32>
    %60 = vector.extract_strided_slice %39 {offsets = [0, 0, 40], sizes = [2, 8, 8], strides = [1, 1, 1]} : vector<2x8x96xf32> to vector<2x8x8xf32>
    %61 = vector.extract_strided_slice %39 {offsets = [0, 0, 72], sizes = [2, 8, 8], strides = [1, 1, 1]} : vector<2x8x96xf32> to vector<2x8x8xf32>
    "tpu.trace_start"() <{level = 10 : i32, message = "bqd,bkd->bqk"}> : () -> ()
    %cst_26 = arith.constant dense<0.000000e+00> : vector<2x8x8xf32>
    %62 = tpu.matmul %59, %60, %cst_26 {dimension_numbers = #tpu.dot_dimension_numbers<[2], [2], [1], [1], [0, 0, 0, 1, 1, 1], [0], [0]>} : vector<2x8x8xf32>, vector<2x8x8xf32>, vector<2x8x8xf32> -> vector<2x8x8xf32>
    "tpu.trace_stop"() : () -> ()
    %cst_27 = arith.constant 0.353553385 : f32
    %63 = vector.broadcast %cst_27 : f32 to vector<2x8x8xf32>
    %64 = arith.mulf %62, %63 : vector<2x8x8xf32>
    %65 = vector.broadcast %30 : vector<2x1x8xf32> to vector<2x8x8xf32>
    %66 = arith.addf %64, %65 : vector<2x8x8xf32>
    %cst_28 = arith.constant dense<0xFF800000> : vector<2x8xf32>
    %67 = vector.multi_reduction <maximumf>, %66, %cst_28 [2] : vector<2x8x8xf32> to vector<2x8xf32>
    %68 = vector.shape_cast %67 : vector<2x8xf32> to vector<2x8x1xf32>
    %69 = vector.broadcast %68 : vector<2x8x1xf32> to vector<2x8x8xf32>
    %70 = arith.subf %66, %69 : vector<2x8x8xf32>
    %71 = math.exp %70 : vector<2x8x8xf32>
    %cst_29 = arith.constant dense<0.000000e+00> : vector<2x8xf32>
    %72 = vector.multi_reduction <add>, %71, %cst_29 [2] : vector<2x8x8xf32> to vector<2x8xf32>
    %73 = vector.shape_cast %72 : vector<2x8xf32> to vector<2x8x1xf32>
    %74 = tpu.reciprocal %73 {approx = true} : vector<2x8x1xf32> -> vector<2x8x1xf32>
    %75 = vector.broadcast %74 : vector<2x8x1xf32> to vector<2x8x8xf32>
    %76 = arith.mulf %71, %75 : vector<2x8x8xf32>
    "tpu.trace_start"() <{level = 10 : i32, message = "bqk,bkd->bqd"}> : () -> ()
    %cst_30 = arith.constant dense<0.000000e+00> : vector<2x8x8xf32>
    %77 = tpu.matmul %76, %61, %cst_30 {dimension_numbers = #tpu.dot_dimension_numbers<[2], [1], [1], [2], [0, 0, 0, 1, 1, 2], [0], [0]>} : vector<2x8x8xf32>, vector<2x8x8xf32>, vector<2x8x8xf32> -> vector<2x8x8xf32>
    "tpu.trace_stop"() : () -> ()
    %78 = vector.extract_strided_slice %39 {offsets = [0, 0, 16], sizes = [2, 8, 8], strides = [1, 1, 1]} : vector<2x8x96xf32> to vector<2x8x8xf32>
    %79 = vector.extract_strided_slice %39 {offsets = [0, 0, 48], sizes = [2, 8, 8], strides = [1, 1, 1]} : vector<2x8x96xf32> to vector<2x8x8xf32>
    %80 = vector.extract_strided_slice %39 {offsets = [0, 0, 80], sizes = [2, 8, 8], strides = [1, 1, 1]} : vector<2x8x96xf32> to vector<2x8x8xf32>
    "tpu.trace_start"() <{level = 10 : i32, message = "bqd,bkd->bqk"}> : () -> ()
    %cst_31 = arith.constant dense<0.000000e+00> : vector<2x8x8xf32>
    %81 = tpu.matmul %78, %79, %cst_31 {dimension_numbers = #tpu.dot_dimension_numbers<[2], [2], [1], [1], [0, 0, 0, 1, 1, 1], [0], [0]>} : vector<2x8x8xf32>, vector<2x8x8xf32>, vector<2x8x8xf32> -> vector<2x8x8xf32>
    "tpu.trace_stop"() : () -> ()
    %cst_32 = arith.constant 0.353553385 : f32
    %82 = vector.broadcast %cst_32 : f32 to vector<2x8x8xf32>
    %83 = arith.mulf %81, %82 : vector<2x8x8xf32>
    %84 = vector.broadcast %30 : vector<2x1x8xf32> to vector<2x8x8xf32>
    %85 = arith.addf %83, %84 : vector<2x8x8xf32>
    %cst_33 = arith.constant dense<0xFF800000> : vector<2x8xf32>
    %86 = vector.multi_reduction <maximumf>, %85, %cst_33 [2] : vector<2x8x8xf32> to vector<2x8xf32>
    %87 = vector.shape_cast %86 : vector<2x8xf32> to vector<2x8x1xf32>
    %88 = vector.broadcast %87 : vector<2x8x1xf32> to vector<2x8x8xf32>
    %89 = arith.subf %85, %88 : vector<2x8x8xf32>
    %90 = math.exp %89 : vector<2x8x8xf32>
    %cst_34 = arith.constant dense<0.000000e+00> : vector<2x8xf32>
    %91 = vector.multi_reduction <add>, %90, %cst_34 [2] : vector<2x8x8xf32> to vector<2x8xf32>
    %92 = vector.shape_cast %91 : vector<2x8xf32> to vector<2x8x1xf32>
    %93 = tpu.reciprocal %92 {approx = true} : vector<2x8x1xf32> -> vector<2x8x1xf32>
    %94 = vector.broadcast %93 : vector<2x8x1xf32> to vector<2x8x8xf32>
    %95 = arith.mulf %90, %94 : vector<2x8x8xf32>
    "tpu.trace_start"() <{level = 10 : i32, message = "bqk,bkd->bqd"}> : () -> ()
    %cst_35 = arith.constant dense<0.000000e+00> : vector<2x8x8xf32>
    %96 = tpu.matmul %95, %80, %cst_35 {dimension_numbers = #tpu.dot_dimension_numbers<[2], [1], [1], [2], [0, 0, 0, 1, 1, 2], [0], [0]>} : vector<2x8x8xf32>, vector<2x8x8xf32>, vector<2x8x8xf32> -> vector<2x8x8xf32>
    "tpu.trace_stop"() : () -> ()
    %97 = vector.extract_strided_slice %39 {offsets = [0, 0, 24], sizes = [2, 8, 8], strides = [1, 1, 1]} : vector<2x8x96xf32> to vector<2x8x8xf32>
    %98 = vector.extract_strided_slice %39 {offsets = [0, 0, 56], sizes = [2, 8, 8], strides = [1, 1, 1]} : vector<2x8x96xf32> to vector<2x8x8xf32>
    %99 = vector.extract_strided_slice %39 {offsets = [0, 0, 88], sizes = [2, 8, 8], strides = [1, 1, 1]} : vector<2x8x96xf32> to vector<2x8x8xf32>
    "tpu.trace_start"() <{level = 10 : i32, message = "bqd,bkd->bqk"}> : () -> ()
    %cst_36 = arith.constant dense<0.000000e+00> : vector<2x8x8xf32>
    %100 = tpu.matmul %97, %98, %cst_36 {dimension_numbers = #tpu.dot_dimension_numbers<[2], [2], [1], [1], [0, 0, 0, 1, 1, 1], [0], [0]>} : vector<2x8x8xf32>, vector<2x8x8xf32>, vector<2x8x8xf32> -> vector<2x8x8xf32>
    "tpu.trace_stop"() : () -> ()
    %cst_37 = arith.constant 0.353553385 : f32
    %101 = vector.broadcast %cst_37 : f32 to vector<2x8x8xf32>
    %102 = arith.mulf %100, %101 : vector<2x8x8xf32>
    %103 = vector.broadcast %30 : vector<2x1x8xf32> to vector<2x8x8xf32>
    %104 = arith.addf %102, %103 : vector<2x8x8xf32>
    %cst_38 = arith.constant dense<0xFF800000> : vector<2x8xf32>
    %105 = vector.multi_reduction <maximumf>, %104, %cst_38 [2] : vector<2x8x8xf32> to vector<2x8xf32>
    %106 = vector.shape_cast %105 : vector<2x8xf32> to vector<2x8x1xf32>
    %107 = vector.broadcast %106 : vector<2x8x1xf32> to vector<2x8x8xf32>
    %108 = arith.subf %104, %107 : vector<2x8x8xf32>
    %109 = math.exp %108 : vector<2x8x8xf32>
    %cst_39 = arith.constant dense<0.000000e+00> : vector<2x8xf32>
    %110 = vector.multi_reduction <add>, %109, %cst_39 [2] : vector<2x8x8xf32> to vector<2x8xf32>
    %111 = vector.shape_cast %110 : vector<2x8xf32> to vector<2x8x1xf32>
    %112 = tpu.reciprocal %111 {approx = true} : vector<2x8x1xf32> -> vector<2x8x1xf32>
    %113 = vector.broadcast %112 : vector<2x8x1xf32> to vector<2x8x8xf32>
    %114 = arith.mulf %109, %113 : vector<2x8x8xf32>
    "tpu.trace_start"() <{level = 10 : i32, message = "bqk,bkd->bqd"}> : () -> ()
    %cst_40 = arith.constant dense<0.000000e+00> : vector<2x8x8xf32>
    %115 = tpu.matmul %114, %99, %cst_40 {dimension_numbers = #tpu.dot_dimension_numbers<[2], [1], [1], [2], [0, 0, 0, 1, 1, 2], [0], [0]>} : vector<2x8x8xf32>, vector<2x8x8xf32>, vector<2x8x8xf32> -> vector<2x8x8xf32>
    "tpu.trace_stop"() : () -> ()
    %116 = tpu.concatenate %58, %77, %96, %115 in 2 : vector<2x8x8xf32>, vector<2x8x8xf32>, vector<2x8x8xf32>, vector<2x8x8xf32> -> vector<2x8x32xf32>
    %117 = vector.shape_cast %116 : vector<2x8x32xf32> to vector<16x32xf32>
    %118 = arith.truncf %117 : vector<16x32xf32> to vector<16x32xbf16>
    %c0_41 = arith.constant 0 : index
    %c0_42 = arith.constant 0 : index
    %c0_43 = arith.constant 0 : index
    %119 = vector.load %arg4[%c0_41, %c0_42, %c0_43] : memref<2x32x32xbf16, #tpu.memory_space<vmem>>, vector<1x32x32xbf16>
    %120 = vector.shape_cast %119 : vector<1x32x32xbf16> to vector<32x32xbf16>
    %cst_44 = arith.constant dense<0.000000e+00> : vector<16x32xf32>
    %121 = tpu.matmul %118, %120, %cst_44 {dimension_numbers = #tpu.dot_dimension_numbers<[1], [0], [0], [1], [0, 0, 1, 1], [], []>} : vector<16x32xbf16>, vector<32x32xbf16>, vector<16x32xf32> -> vector<16x32xf32>
    %c0_45 = arith.constant 0 : index
    %c1_46 = arith.constant 1 : index
    %c0_47 = arith.constant 0 : index
    %122 = vector.load %arg7[%c0_45, %c1_46, %c0_47] : memref<2x8x96xf32, #tpu.memory_space<vmem>>, vector<1x1x32xf32>
    %123 = vector.shape_cast %122 : vector<1x1x32xf32> to vector<1x32xf32>
    %124 = vector.broadcast %123 : vector<1x32xf32> to vector<16x32xf32>
    %125 = arith.addf %121, %124 : vector<16x32xf32>
    %126 = arith.addf %29, %125 : vector<16x32xf32>
    %c0_48 = arith.constant 0 : index
    %c2 = arith.constant 2 : index
    %c0_49 = arith.constant 0 : index
    %127 = vector.load %arg7[%c0_48, %c2, %c0_49] : memref<2x8x96xf32, #tpu.memory_space<vmem>>, vector<1x1x32xf32>
    %128 = vector.shape_cast %127 : vector<1x1x32xf32> to vector<1x32xf32>
    %c0_50 = arith.constant 0 : index
    %c3 = arith.constant 3 : index
    %c0_51 = arith.constant 0 : index
    %129 = vector.load %arg7[%c0_50, %c3, %c0_51] : memref<2x8x96xf32, #tpu.memory_space<vmem>>, vector<1x1x32xf32>
    %130 = vector.shape_cast %129 : vector<1x1x32xf32> to vector<1x32xf32>
    %cst_52 = arith.constant dense<0.000000e+00> : vector<16xf32>
    %131 = vector.multi_reduction <add>, %126, %cst_52 [1] : vector<16x32xf32> to vector<16xf32>
    %132 = vector.shape_cast %131 : vector<16xf32> to vector<16x1xf32>
    %cst_53 = arith.constant 3.200000e+01 : f32
    %133 = vector.broadcast %cst_53 : f32 to vector<16x1xf32>
    %134 = arith.divf %132, %133 : vector<16x1xf32>
    %135 = vector.broadcast %134 : vector<16x1xf32> to vector<16x32xf32>
    %136 = arith.subf %126, %135 : vector<16x32xf32>
    %137 = arith.mulf %136, %136 : vector<16x32xf32>
    %cst_54 = arith.constant dense<0.000000e+00> : vector<16xf32>
    %138 = vector.multi_reduction <add>, %137, %cst_54 [1] : vector<16x32xf32> to vector<16xf32>
    %139 = vector.shape_cast %138 : vector<16xf32> to vector<16x1xf32>
    %cst_55 = arith.constant 3.200000e+01 : f32
    %140 = vector.broadcast %cst_55 : f32 to vector<16x1xf32>
    %141 = arith.divf %139, %140 : vector<16x1xf32>
    %142 = vector.broadcast %134 : vector<16x1xf32> to vector<16x32xf32>
    %143 = arith.subf %126, %142 : vector<16x32xf32>
    %cst_56 = arith.constant 9.99999996E-13 : f32
    %144 = vector.broadcast %cst_56 : f32 to vector<16x1xf32>
    %145 = arith.addf %141, %144 : vector<16x1xf32>
    %146 = math.rsqrt %145 : vector<16x1xf32>
    %147 = vector.broadcast %146 : vector<16x1xf32> to vector<16x32xf32>
    %148 = arith.mulf %143, %147 : vector<16x32xf32>
    %149 = vector.broadcast %128 : vector<1x32xf32> to vector<16x32xf32>
    %150 = arith.mulf %148, %149 : vector<16x32xf32>
    %151 = vector.broadcast %130 : vector<1x32xf32> to vector<16x32xf32>
    %152 = arith.addf %150, %151 : vector<16x32xf32>
    %153 = arith.truncf %152 : vector<16x32xf32> to vector<16x32xbf16>
    %c0_57 = arith.constant 0 : index
    %c0_58 = arith.constant 0 : index
    %c0_59 = arith.constant 0 : index
    %154 = vector.load %arg5[%c0_57, %c0_58, %c0_59] : memref<2x32x64xbf16, #tpu.memory_space<vmem>>, vector<1x32x64xbf16>
    %155 = vector.shape_cast %154 : vector<1x32x64xbf16> to vector<32x64xbf16>
    %cst_60 = arith.constant dense<0.000000e+00> : vector<16x64xf32>
    %156 = tpu.matmul %153, %155, %cst_60 {dimension_numbers = #tpu.dot_dimension_numbers<[1], [0], [0], [1], [0, 0, 1, 1], [], []>} : vector<16x32xbf16>, vector<32x64xbf16>, vector<16x64xf32> -> vector<16x64xf32>
    %c0_61 = arith.constant 0 : index
    %c4 = arith.constant 4 : index
    %c0_62 = arith.constant 0 : index
    %157 = vector.load %arg7[%c0_61, %c4, %c0_62] : memref<2x8x96xf32, #tpu.memory_space<vmem>>, vector<1x1x64xf32>
    %158 = vector.shape_cast %157 : vector<1x1x64xf32> to vector<1x64xf32>
    %159 = vector.broadcast %158 : vector<1x64xf32> to vector<16x64xf32>
    %160 = arith.addf %156, %159 : vector<16x64xf32>
    %cst_63 = arith.constant 5.000000e-01 : f32
    %161 = vector.broadcast %cst_63 : f32 to vector<16x64xf32>
    %162 = arith.mulf %161, %160 : vector<16x64xf32>
    %cst_64 = arith.constant 4.471500e-02 : f32
    %163 = vector.broadcast %cst_64 : f32 to vector<16x64xf32>
    %164 = arith.mulf %163, %160 : vector<16x64xf32>
    %165 = arith.mulf %164, %160 : vector<16x64xf32>
    %166 = arith.mulf %165, %160 : vector<16x64xf32>
    %167 = arith.addf %160, %166 : vector<16x64xf32>
    %cst_65 = arith.constant 0.797884583 : f32
    %168 = vector.broadcast %cst_65 : f32 to vector<16x64xf32>
    %169 = arith.mulf %168, %167 : vector<16x64xf32>
    %170 = math.tanh %169 : vector<16x64xf32>
    %cst_66 = arith.constant 1.000000e+00 : f32
    %171 = vector.broadcast %cst_66 : f32 to vector<16x64xf32>
    %172 = arith.addf %171, %170 : vector<16x64xf32>
    %173 = arith.mulf %162, %172 : vector<16x64xf32>
    %174 = arith.truncf %173 : vector<16x64xf32> to vector<16x64xbf16>
    %c0_67 = arith.constant 0 : index
    %c0_68 = arith.constant 0 : index
    %c0_69 = arith.constant 0 : index
    %175 = vector.load %arg6[%c0_67, %c0_68, %c0_69] : memref<2x64x32xbf16, #tpu.memory_space<vmem>>, vector<1x64x32xbf16>
    %176 = vector.shape_cast %175 : vector<1x64x32xbf16> to vector<64x32xbf16>
    %cst_70 = arith.constant dense<0.000000e+00> : vector<16x32xf32>
    %177 = tpu.matmul %174, %176, %cst_70 {dimension_numbers = #tpu.dot_dimension_numbers<[1], [0], [0], [1], [0, 0, 1, 1], [], []>} : vector<16x64xbf16>, vector<64x32xbf16>, vector<16x32xf32> -> vector<16x32xf32>
    %c0_71 = arith.constant 0 : index
    %c5 = arith.constant 5 : index
    %c0_72 = arith.constant 0 : index
    %178 = vector.load %arg7[%c0_71, %c5, %c0_72] : memref<2x8x96xf32, #tpu.memory_space<vmem>>, vector<1x1x32xf32>
    %179 = vector.shape_cast %178 : vector<1x1x32xf32> to vector<1x32xf32>
    %180 = vector.broadcast %179 : vector<1x32xf32> to vector<16x32xf32>
    %181 = arith.addf %177, %180 : vector<16x32xf32>
    %182 = arith.addf %152, %181 : vector<16x32xf32>
    %c0_73 = arith.constant 0 : index
    %c6 = arith.constant 6 : index
    %c0_74 = arith.constant 0 : index
    %183 = vector.load %arg7[%c0_73, %c6, %c0_74] : memref<2x8x96xf32, #tpu.memory_space<vmem>>, vector<1x1x32xf32>
    %184 = vector.shape_cast %183 : vector<1x1x32xf32> to vector<1x32xf32>
    %c0_75 = arith.constant 0 : index
    %c7 = arith.constant 7 : index
    %c0_76 = arith.constant 0 : index
    %185 = vector.load %arg7[%c0_75, %c7, %c0_76] : memref<2x8x96xf32, #tpu.memory_space<vmem>>, vector<1x1x32xf32>
    %186 = vector.shape_cast %185 : vector<1x1x32xf32> to vector<1x32xf32>
    %cst_77 = arith.constant dense<0.000000e+00> : vector<16xf32>
    %187 = vector.multi_reduction <add>, %182, %cst_77 [1] : vector<16x32xf32> to vector<16xf32>
    %188 = vector.shape_cast %187 : vector<16xf32> to vector<16x1xf32>
    %cst_78 = arith.constant 3.200000e+01 : f32
    %189 = vector.broadcast %cst_78 : f32 to vector<16x1xf32>
    %190 = arith.divf %188, %189 : vector<16x1xf32>
    %191 = vector.broadcast %190 : vector<16x1xf32> to vector<16x32xf32>
    %192 = arith.subf %182, %191 : vector<16x32xf32>
    %193 = arith.mulf %192, %192 : vector<16x32xf32>
    %cst_79 = arith.constant dense<0.000000e+00> : vector<16xf32>
    %194 = vector.multi_reduction <add>, %193, %cst_79 [1] : vector<16x32xf32> to vector<16xf32>
    %195 = vector.shape_cast %194 : vector<16xf32> to vector<16x1xf32>
    %cst_80 = arith.constant 3.200000e+01 : f32
    %196 = vector.broadcast %cst_80 : f32 to vector<16x1xf32>
    %197 = arith.divf %195, %196 : vector<16x1xf32>
    %198 = vector.broadcast %190 : vector<16x1xf32> to vector<16x32xf32>
    %199 = arith.subf %182, %198 : vector<16x32xf32>
    %cst_81 = arith.constant 9.99999996E-13 : f32
    %200 = vector.broadcast %cst_81 : f32 to vector<16x1xf32>
    %201 = arith.addf %197, %200 : vector<16x1xf32>
    %202 = math.rsqrt %201 : vector<16x1xf32>
    %203 = vector.broadcast %202 : vector<16x1xf32> to vector<16x32xf32>
    %204 = arith.mulf %199, %203 : vector<16x32xf32>
    %205 = vector.broadcast %184 : vector<1x32xf32> to vector<16x32xf32>
    %206 = arith.mulf %204, %205 : vector<16x32xf32>
    %207 = vector.broadcast %186 : vector<1x32xf32> to vector<16x32xf32>
    %208 = arith.addf %206, %207 : vector<16x32xf32>
    %209 = arith.truncf %208 : vector<16x32xf32> to vector<16x32xbf16>
    %c1_82 = arith.constant 1 : index
    %c0_83 = arith.constant 0 : index
    %c0_84 = arith.constant 0 : index
    %210 = vector.load %arg3[%c1_82, %c0_83, %c0_84] : memref<2x32x96xbf16, #tpu.memory_space<vmem>>, vector<1x32x96xbf16>
    %211 = vector.shape_cast %210 : vector<1x32x96xbf16> to vector<32x96xbf16>
    %cst_85 = arith.constant dense<0.000000e+00> : vector<16x96xf32>
    %212 = tpu.matmul %209, %211, %cst_85 {dimension_numbers = #tpu.dot_dimension_numbers<[1], [0], [0], [1], [0, 0, 1, 1], [], []>} : vector<16x32xbf16>, vector<32x96xbf16>, vector<16x96xf32> -> vector<16x96xf32>
    %c1_86 = arith.constant 1 : index
    %c0_87 = arith.constant 0 : index
    %c0_88 = arith.constant 0 : index
    %213 = vector.load %arg7[%c1_86, %c0_87, %c0_88] : memref<2x8x96xf32, #tpu.memory_space<vmem>>, vector<1x1x96xf32>
    %214 = vector.shape_cast %213 : vector<1x1x96xf32> to vector<1x96xf32>
    %215 = vector.broadcast %214 : vector<1x96xf32> to vector<16x96xf32>
    %216 = arith.addf %212, %215 : vector<16x96xf32>
    %217 = vector.shape_cast %216 : vector<16x96xf32> to vector<2x8x96xf32>
    %218 = vector.extract_strided_slice %217 {offsets = [0, 0, 0], sizes = [2, 8, 8], strides = [1, 1, 1]} : vector<2x8x96xf32> to vector<2x8x8xf32>
    %219 = vector.extract_strided_slice %217 {offsets = [0, 0, 32], sizes = [2, 8, 8], strides = [1, 1, 1]} : vector<2x8x96xf32> to vector<2x8x8xf32>
    %220 = vector.extract_strided_slice %217 {offsets = [0, 0, 64], sizes = [2, 8, 8], strides = [1, 1, 1]} : vector<2x8x96xf32> to vector<2x8x8xf32>
    "tpu.trace_start"() <{level = 10 : i32, message = "bqd,bkd->bqk"}> : () -> ()
    %cst_89 = arith.constant dense<0.000000e+00> : vector<2x8x8xf32>
    %221 = tpu.matmul %218, %219, %cst_89 {dimension_numbers = #tpu.dot_dimension_numbers<[2], [2], [1], [1], [0, 0, 0, 1, 1, 1], [0], [0]>} : vector<2x8x8xf32>, vector<2x8x8xf32>, vector<2x8x8xf32> -> vector<2x8x8xf32>
    "tpu.trace_stop"() : () -> ()
    %cst_90 = arith.constant 0.353553385 : f32
    %222 = vector.broadcast %cst_90 : f32 to vector<2x8x8xf32>
    %223 = arith.mulf %221, %222 : vector<2x8x8xf32>
    %224 = vector.broadcast %30 : vector<2x1x8xf32> to vector<2x8x8xf32>
    %225 = arith.addf %223, %224 : vector<2x8x8xf32>
    %cst_91 = arith.constant dense<0xFF800000> : vector<2x8xf32>
    %226 = vector.multi_reduction <maximumf>, %225, %cst_91 [2] : vector<2x8x8xf32> to vector<2x8xf32>
    %227 = vector.shape_cast %226 : vector<2x8xf32> to vector<2x8x1xf32>
    %228 = vector.broadcast %227 : vector<2x8x1xf32> to vector<2x8x8xf32>
    %229 = arith.subf %225, %228 : vector<2x8x8xf32>
    %230 = math.exp %229 : vector<2x8x8xf32>
    %cst_92 = arith.constant dense<0.000000e+00> : vector<2x8xf32>
    %231 = vector.multi_reduction <add>, %230, %cst_92 [2] : vector<2x8x8xf32> to vector<2x8xf32>
    %232 = vector.shape_cast %231 : vector<2x8xf32> to vector<2x8x1xf32>
    %233 = tpu.reciprocal %232 {approx = true} : vector<2x8x1xf32> -> vector<2x8x1xf32>
    %234 = vector.broadcast %233 : vector<2x8x1xf32> to vector<2x8x8xf32>
    %235 = arith.mulf %230, %234 : vector<2x8x8xf32>
    "tpu.trace_start"() <{level = 10 : i32, message = "bqk,bkd->bqd"}> : () -> ()
    %cst_93 = arith.constant dense<0.000000e+00> : vector<2x8x8xf32>
    %236 = tpu.matmul %235, %220, %cst_93 {dimension_numbers = #tpu.dot_dimension_numbers<[2], [1], [1], [2], [0, 0, 0, 1, 1, 2], [0], [0]>} : vector<2x8x8xf32>, vector<2x8x8xf32>, vector<2x8x8xf32> -> vector<2x8x8xf32>
    "tpu.trace_stop"() : () -> ()
    %237 = vector.extract_strided_slice %217 {offsets = [0, 0, 8], sizes = [2, 8, 8], strides = [1, 1, 1]} : vector<2x8x96xf32> to vector<2x8x8xf32>
    %238 = vector.extract_strided_slice %217 {offsets = [0, 0, 40], sizes = [2, 8, 8], strides = [1, 1, 1]} : vector<2x8x96xf32> to vector<2x8x8xf32>
    %239 = vector.extract_strided_slice %217 {offsets = [0, 0, 72], sizes = [2, 8, 8], strides = [1, 1, 1]} : vector<2x8x96xf32> to vector<2x8x8xf32>
    "tpu.trace_start"() <{level = 10 : i32, message = "bqd,bkd->bqk"}> : () -> ()
    %cst_94 = arith.constant dense<0.000000e+00> : vector<2x8x8xf32>
    %240 = tpu.matmul %237, %238, %cst_94 {dimension_numbers = #tpu.dot_dimension_numbers<[2], [2], [1], [1], [0, 0, 0, 1, 1, 1], [0], [0]>} : vector<2x8x8xf32>, vector<2x8x8xf32>, vector<2x8x8xf32> -> vector<2x8x8xf32>
    "tpu.trace_stop"() : () -> ()
    %cst_95 = arith.constant 0.353553385 : f32
    %241 = vector.broadcast %cst_95 : f32 to vector<2x8x8xf32>
    %242 = arith.mulf %240, %241 : vector<2x8x8xf32>
    %243 = vector.broadcast %30 : vector<2x1x8xf32> to vector<2x8x8xf32>
    %244 = arith.addf %242, %243 : vector<2x8x8xf32>
    %cst_96 = arith.constant dense<0xFF800000> : vector<2x8xf32>
    %245 = vector.multi_reduction <maximumf>, %244, %cst_96 [2] : vector<2x8x8xf32> to vector<2x8xf32>
    %246 = vector.shape_cast %245 : vector<2x8xf32> to vector<2x8x1xf32>
    %247 = vector.broadcast %246 : vector<2x8x1xf32> to vector<2x8x8xf32>
    %248 = arith.subf %244, %247 : vector<2x8x8xf32>
    %249 = math.exp %248 : vector<2x8x8xf32>
    %cst_97 = arith.constant dense<0.000000e+00> : vector<2x8xf32>
    %250 = vector.multi_reduction <add>, %249, %cst_97 [2] : vector<2x8x8xf32> to vector<2x8xf32>
    %251 = vector.shape_cast %250 : vector<2x8xf32> to vector<2x8x1xf32>
    %252 = tpu.reciprocal %251 {approx = true} : vector<2x8x1xf32> -> vector<2x8x1xf32>
    %253 = vector.broadcast %252 : vector<2x8x1xf32> to vector<2x8x8xf32>
    %254 = arith.mulf %249, %253 : vector<2x8x8xf32>
    "tpu.trace_start"() <{level = 10 : i32, message = "bqk,bkd->bqd"}> : () -> ()
    %cst_98 = arith.constant dense<0.000000e+00> : vector<2x8x8xf32>
    %255 = tpu.matmul %254, %239, %cst_98 {dimension_numbers = #tpu.dot_dimension_numbers<[2], [1], [1], [2], [0, 0, 0, 1, 1, 2], [0], [0]>} : vector<2x8x8xf32>, vector<2x8x8xf32>, vector<2x8x8xf32> -> vector<2x8x8xf32>
    "tpu.trace_stop"() : () -> ()
    %256 = vector.extract_strided_slice %217 {offsets = [0, 0, 16], sizes = [2, 8, 8], strides = [1, 1, 1]} : vector<2x8x96xf32> to vector<2x8x8xf32>
    %257 = vector.extract_strided_slice %217 {offsets = [0, 0, 48], sizes = [2, 8, 8], strides = [1, 1, 1]} : vector<2x8x96xf32> to vector<2x8x8xf32>
    %258 = vector.extract_strided_slice %217 {offsets = [0, 0, 80], sizes = [2, 8, 8], strides = [1, 1, 1]} : vector<2x8x96xf32> to vector<2x8x8xf32>
    "tpu.trace_start"() <{level = 10 : i32, message = "bqd,bkd->bqk"}> : () -> ()
    %cst_99 = arith.constant dense<0.000000e+00> : vector<2x8x8xf32>
    %259 = tpu.matmul %256, %257, %cst_99 {dimension_numbers = #tpu.dot_dimension_numbers<[2], [2], [1], [1], [0, 0, 0, 1, 1, 1], [0], [0]>} : vector<2x8x8xf32>, vector<2x8x8xf32>, vector<2x8x8xf32> -> vector<2x8x8xf32>
    "tpu.trace_stop"() : () -> ()
    %cst_100 = arith.constant 0.353553385 : f32
    %260 = vector.broadcast %cst_100 : f32 to vector<2x8x8xf32>
    %261 = arith.mulf %259, %260 : vector<2x8x8xf32>
    %262 = vector.broadcast %30 : vector<2x1x8xf32> to vector<2x8x8xf32>
    %263 = arith.addf %261, %262 : vector<2x8x8xf32>
    %cst_101 = arith.constant dense<0xFF800000> : vector<2x8xf32>
    %264 = vector.multi_reduction <maximumf>, %263, %cst_101 [2] : vector<2x8x8xf32> to vector<2x8xf32>
    %265 = vector.shape_cast %264 : vector<2x8xf32> to vector<2x8x1xf32>
    %266 = vector.broadcast %265 : vector<2x8x1xf32> to vector<2x8x8xf32>
    %267 = arith.subf %263, %266 : vector<2x8x8xf32>
    %268 = math.exp %267 : vector<2x8x8xf32>
    %cst_102 = arith.constant dense<0.000000e+00> : vector<2x8xf32>
    %269 = vector.multi_reduction <add>, %268, %cst_102 [2] : vector<2x8x8xf32> to vector<2x8xf32>
    %270 = vector.shape_cast %269 : vector<2x8xf32> to vector<2x8x1xf32>
    %271 = tpu.reciprocal %270 {approx = true} : vector<2x8x1xf32> -> vector<2x8x1xf32>
    %272 = vector.broadcast %271 : vector<2x8x1xf32> to vector<2x8x8xf32>
    %273 = arith.mulf %268, %272 : vector<2x8x8xf32>
    "tpu.trace_start"() <{level = 10 : i32, message = "bqk,bkd->bqd"}> : () -> ()
    %cst_103 = arith.constant dense<0.000000e+00> : vector<2x8x8xf32>
    %274 = tpu.matmul %273, %258, %cst_103 {dimension_numbers = #tpu.dot_dimension_numbers<[2], [1], [1], [2], [0, 0, 0, 1, 1, 2], [0], [0]>} : vector<2x8x8xf32>, vector<2x8x8xf32>, vector<2x8x8xf32> -> vector<2x8x8xf32>
    "tpu.trace_stop"() : () -> ()
    %275 = vector.extract_strided_slice %217 {offsets = [0, 0, 24], sizes = [2, 8, 8], strides = [1, 1, 1]} : vector<2x8x96xf32> to vector<2x8x8xf32>
    %276 = vector.extract_strided_slice %217 {offsets = [0, 0, 56], sizes = [2, 8, 8], strides = [1, 1, 1]} : vector<2x8x96xf32> to vector<2x8x8xf32>
    %277 = vector.extract_strided_slice %217 {offsets = [0, 0, 88], sizes = [2, 8, 8], strides = [1, 1, 1]} : vector<2x8x96xf32> to vector<2x8x8xf32>
    "tpu.trace_start"() <{level = 10 : i32, message = "bqd,bkd->bqk"}> : () -> ()
    %cst_104 = arith.constant dense<0.000000e+00> : vector<2x8x8xf32>
    %278 = tpu.matmul %275, %276, %cst_104 {dimension_numbers = #tpu.dot_dimension_numbers<[2], [2], [1], [1], [0, 0, 0, 1, 1, 1], [0], [0]>} : vector<2x8x8xf32>, vector<2x8x8xf32>, vector<2x8x8xf32> -> vector<2x8x8xf32>
    "tpu.trace_stop"() : () -> ()
    %cst_105 = arith.constant 0.353553385 : f32
    %279 = vector.broadcast %cst_105 : f32 to vector<2x8x8xf32>
    %280 = arith.mulf %278, %279 : vector<2x8x8xf32>
    %281 = vector.broadcast %30 : vector<2x1x8xf32> to vector<2x8x8xf32>
    %282 = arith.addf %280, %281 : vector<2x8x8xf32>
    %cst_106 = arith.constant dense<0xFF800000> : vector<2x8xf32>
    %283 = vector.multi_reduction <maximumf>, %282, %cst_106 [2] : vector<2x8x8xf32> to vector<2x8xf32>
    %284 = vector.shape_cast %283 : vector<2x8xf32> to vector<2x8x1xf32>
    %285 = vector.broadcast %284 : vector<2x8x1xf32> to vector<2x8x8xf32>
    %286 = arith.subf %282, %285 : vector<2x8x8xf32>
    %287 = math.exp %286 : vector<2x8x8xf32>
    %cst_107 = arith.constant dense<0.000000e+00> : vector<2x8xf32>
    %288 = vector.multi_reduction <add>, %287, %cst_107 [2] : vector<2x8x8xf32> to vector<2x8xf32>
    %289 = vector.shape_cast %288 : vector<2x8xf32> to vector<2x8x1xf32>
    %290 = tpu.reciprocal %289 {approx = true} : vector<2x8x1xf32> -> vector<2x8x1xf32>
    %291 = vector.broadcast %290 : vector<2x8x1xf32> to vector<2x8x8xf32>
    %292 = arith.mulf %287, %291 : vector<2x8x8xf32>
    "tpu.trace_start"() <{level = 10 : i32, message = "bqk,bkd->bqd"}> : () -> ()
    %cst_108 = arith.constant dense<0.000000e+00> : vector<2x8x8xf32>
    %293 = tpu.matmul %292, %277, %cst_108 {dimension_numbers = #tpu.dot_dimension_numbers<[2], [1], [1], [2], [0, 0, 0, 1, 1, 2], [0], [0]>} : vector<2x8x8xf32>, vector<2x8x8xf32>, vector<2x8x8xf32> -> vector<2x8x8xf32>
    "tpu.trace_stop"() : () -> ()
    %294 = tpu.concatenate %236, %255, %274, %293 in 2 : vector<2x8x8xf32>, vector<2x8x8xf32>, vector<2x8x8xf32>, vector<2x8x8xf32> -> vector<2x8x32xf32>
    %295 = vector.shape_cast %294 : vector<2x8x32xf32> to vector<16x32xf32>
    %296 = arith.truncf %295 : vector<16x32xf32> to vector<16x32xbf16>
    %c1_109 = arith.constant 1 : index
    %c0_110 = arith.constant 0 : index
    %c0_111 = arith.constant 0 : index
    %297 = vector.load %arg4[%c1_109, %c0_110, %c0_111] : memref<2x32x32xbf16, #tpu.memory_space<vmem>>, vector<1x32x32xbf16>
    %298 = vector.shape_cast %297 : vector<1x32x32xbf16> to vector<32x32xbf16>
    %cst_112 = arith.constant dense<0.000000e+00> : vector<16x32xf32>
    %299 = tpu.matmul %296, %298, %cst_112 {dimension_numbers = #tpu.dot_dimension_numbers<[1], [0], [0], [1], [0, 0, 1, 1], [], []>} : vector<16x32xbf16>, vector<32x32xbf16>, vector<16x32xf32> -> vector<16x32xf32>
    %c1_113 = arith.constant 1 : index
    %c1_114 = arith.constant 1 : index
    %c0_115 = arith.constant 0 : index
    %300 = vector.load %arg7[%c1_113, %c1_114, %c0_115] : memref<2x8x96xf32, #tpu.memory_space<vmem>>, vector<1x1x32xf32>
    %301 = vector.shape_cast %300 : vector<1x1x32xf32> to vector<1x32xf32>
    %302 = vector.broadcast %301 : vector<1x32xf32> to vector<16x32xf32>
    %303 = arith.addf %299, %302 : vector<16x32xf32>
    %304 = arith.addf %208, %303 : vector<16x32xf32>
    %c1_116 = arith.constant 1 : index
    %c2_117 = arith.constant 2 : index
    %c0_118 = arith.constant 0 : index
    %305 = vector.load %arg7[%c1_116, %c2_117, %c0_118] : memref<2x8x96xf32, #tpu.memory_space<vmem>>, vector<1x1x32xf32>
    %306 = vector.shape_cast %305 : vector<1x1x32xf32> to vector<1x32xf32>
    %c1_119 = arith.constant 1 : index
    %c3_120 = arith.constant 3 : index
    %c0_121 = arith.constant 0 : index
    %307 = vector.load %arg7[%c1_119, %c3_120, %c0_121] : memref<2x8x96xf32, #tpu.memory_space<vmem>>, vector<1x1x32xf32>
    %308 = vector.shape_cast %307 : vector<1x1x32xf32> to vector<1x32xf32>
    %cst_122 = arith.constant dense<0.000000e+00> : vector<16xf32>
    %309 = vector.multi_reduction <add>, %304, %cst_122 [1] : vector<16x32xf32> to vector<16xf32>
    %310 = vector.shape_cast %309 : vector<16xf32> to vector<16x1xf32>
    %cst_123 = arith.constant 3.200000e+01 : f32
    %311 = vector.broadcast %cst_123 : f32 to vector<16x1xf32>
    %312 = arith.divf %310, %311 : vector<16x1xf32>
    %313 = vector.broadcast %312 : vector<16x1xf32> to vector<16x32xf32>
    %314 = arith.subf %304, %313 : vector<16x32xf32>
    %315 = arith.mulf %314, %314 : vector<16x32xf32>
    %cst_124 = arith.constant dense<0.000000e+00> : vector<16xf32>
    %316 = vector.multi_reduction <add>, %315, %cst_124 [1] : vector<16x32xf32> to vector<16xf32>
    %317 = vector.shape_cast %316 : vector<16xf32> to vector<16x1xf32>
    %cst_125 = arith.constant 3.200000e+01 : f32
    %318 = vector.broadcast %cst_125 : f32 to vector<16x1xf32>
    %319 = arith.divf %317, %318 : vector<16x1xf32>
    %320 = vector.broadcast %312 : vector<16x1xf32> to vector<16x32xf32>
    %321 = arith.subf %304, %320 : vector<16x32xf32>
    %cst_126 = arith.constant 9.99999996E-13 : f32
    %322 = vector.broadcast %cst_126 : f32 to vector<16x1xf32>
    %323 = arith.addf %319, %322 : vector<16x1xf32>
    %324 = math.rsqrt %323 : vector<16x1xf32>
    %325 = vector.broadcast %324 : vector<16x1xf32> to vector<16x32xf32>
    %326 = arith.mulf %321, %325 : vector<16x32xf32>
    %327 = vector.broadcast %306 : vector<1x32xf32> to vector<16x32xf32>
    %328 = arith.mulf %326, %327 : vector<16x32xf32>
    %329 = vector.broadcast %308 : vector<1x32xf32> to vector<16x32xf32>
    %330 = arith.addf %328, %329 : vector<16x32xf32>
    %331 = arith.truncf %330 : vector<16x32xf32> to vector<16x32xbf16>
    %c1_127 = arith.constant 1 : index
    %c0_128 = arith.constant 0 : index
    %c0_129 = arith.constant 0 : index
    %332 = vector.load %arg5[%c1_127, %c0_128, %c0_129] : memref<2x32x64xbf16, #tpu.memory_space<vmem>>, vector<1x32x64xbf16>
    %333 = vector.shape_cast %332 : vector<1x32x64xbf16> to vector<32x64xbf16>
    %cst_130 = arith.constant dense<0.000000e+00> : vector<16x64xf32>
    %334 = tpu.matmul %331, %333, %cst_130 {dimension_numbers = #tpu.dot_dimension_numbers<[1], [0], [0], [1], [0, 0, 1, 1], [], []>} : vector<16x32xbf16>, vector<32x64xbf16>, vector<16x64xf32> -> vector<16x64xf32>
    %c1_131 = arith.constant 1 : index
    %c4_132 = arith.constant 4 : index
    %c0_133 = arith.constant 0 : index
    %335 = vector.load %arg7[%c1_131, %c4_132, %c0_133] : memref<2x8x96xf32, #tpu.memory_space<vmem>>, vector<1x1x64xf32>
    %336 = vector.shape_cast %335 : vector<1x1x64xf32> to vector<1x64xf32>
    %337 = vector.broadcast %336 : vector<1x64xf32> to vector<16x64xf32>
    %338 = arith.addf %334, %337 : vector<16x64xf32>
    %cst_134 = arith.constant 5.000000e-01 : f32
    %339 = vector.broadcast %cst_134 : f32 to vector<16x64xf32>
    %340 = arith.mulf %339, %338 : vector<16x64xf32>
    %cst_135 = arith.constant 4.471500e-02 : f32
    %341 = vector.broadcast %cst_135 : f32 to vector<16x64xf32>
    %342 = arith.mulf %341, %338 : vector<16x64xf32>
    %343 = arith.mulf %342, %338 : vector<16x64xf32>
    %344 = arith.mulf %343, %338 : vector<16x64xf32>
    %345 = arith.addf %338, %344 : vector<16x64xf32>
    %cst_136 = arith.constant 0.797884583 : f32
    %346 = vector.broadcast %cst_136 : f32 to vector<16x64xf32>
    %347 = arith.mulf %346, %345 : vector<16x64xf32>
    %348 = math.tanh %347 : vector<16x64xf32>
    %cst_137 = arith.constant 1.000000e+00 : f32
    %349 = vector.broadcast %cst_137 : f32 to vector<16x64xf32>
    %350 = arith.addf %349, %348 : vector<16x64xf32>
    %351 = arith.mulf %340, %350 : vector<16x64xf32>
    %352 = arith.truncf %351 : vector<16x64xf32> to vector<16x64xbf16>
    %c1_138 = arith.constant 1 : index
    %c0_139 = arith.constant 0 : index
    %c0_140 = arith.constant 0 : index
    %353 = vector.load %arg6[%c1_138, %c0_139, %c0_140] : memref<2x64x32xbf16, #tpu.memory_space<vmem>>, vector<1x64x32xbf16>
    %354 = vector.shape_cast %353 : vector<1x64x32xbf16> to vector<64x32xbf16>
    %cst_141 = arith.constant dense<0.000000e+00> : vector<16x32xf32>
    %355 = tpu.matmul %352, %354, %cst_141 {dimension_numbers = #tpu.dot_dimension_numbers<[1], [0], [0], [1], [0, 0, 1, 1], [], []>} : vector<16x64xbf16>, vector<64x32xbf16>, vector<16x32xf32> -> vector<16x32xf32>
    %c1_142 = arith.constant 1 : index
    %c5_143 = arith.constant 5 : index
    %c0_144 = arith.constant 0 : index
    %356 = vector.load %arg7[%c1_142, %c5_143, %c0_144] : memref<2x8x96xf32, #tpu.memory_space<vmem>>, vector<1x1x32xf32>
    %357 = vector.shape_cast %356 : vector<1x1x32xf32> to vector<1x32xf32>
    %358 = vector.broadcast %357 : vector<1x32xf32> to vector<16x32xf32>
    %359 = arith.addf %355, %358 : vector<16x32xf32>
    %360 = arith.addf %330, %359 : vector<16x32xf32>
    %c1_145 = arith.constant 1 : index
    %c6_146 = arith.constant 6 : index
    %c0_147 = arith.constant 0 : index
    %361 = vector.load %arg7[%c1_145, %c6_146, %c0_147] : memref<2x8x96xf32, #tpu.memory_space<vmem>>, vector<1x1x32xf32>
    %362 = vector.shape_cast %361 : vector<1x1x32xf32> to vector<1x32xf32>
    %c1_148 = arith.constant 1 : index
    %c7_149 = arith.constant 7 : index
    %c0_150 = arith.constant 0 : index
    %363 = vector.load %arg7[%c1_148, %c7_149, %c0_150] : memref<2x8x96xf32, #tpu.memory_space<vmem>>, vector<1x1x32xf32>
    %364 = vector.shape_cast %363 : vector<1x1x32xf32> to vector<1x32xf32>
    %cst_151 = arith.constant dense<0.000000e+00> : vector<16xf32>
    %365 = vector.multi_reduction <add>, %360, %cst_151 [1] : vector<16x32xf32> to vector<16xf32>
    %366 = vector.shape_cast %365 : vector<16xf32> to vector<16x1xf32>
    %cst_152 = arith.constant 3.200000e+01 : f32
    %367 = vector.broadcast %cst_152 : f32 to vector<16x1xf32>
    %368 = arith.divf %366, %367 : vector<16x1xf32>
    %369 = vector.broadcast %368 : vector<16x1xf32> to vector<16x32xf32>
    %370 = arith.subf %360, %369 : vector<16x32xf32>
    %371 = arith.mulf %370, %370 : vector<16x32xf32>
    %cst_153 = arith.constant dense<0.000000e+00> : vector<16xf32>
    %372 = vector.multi_reduction <add>, %371, %cst_153 [1] : vector<16x32xf32> to vector<16xf32>
    %373 = vector.shape_cast %372 : vector<16xf32> to vector<16x1xf32>
    %cst_154 = arith.constant 3.200000e+01 : f32
    %374 = vector.broadcast %cst_154 : f32 to vector<16x1xf32>
    %375 = arith.divf %373, %374 : vector<16x1xf32>
    %376 = vector.broadcast %368 : vector<16x1xf32> to vector<16x32xf32>
    %377 = arith.subf %360, %376 : vector<16x32xf32>
    %cst_155 = arith.constant 9.99999996E-13 : f32
    %378 = vector.broadcast %cst_155 : f32 to vector<16x1xf32>
    %379 = arith.addf %375, %378 : vector<16x1xf32>
    %380 = math.rsqrt %379 : vector<16x1xf32>
    %381 = vector.broadcast %380 : vector<16x1xf32> to vector<16x32xf32>
    %382 = arith.mulf %377, %381 : vector<16x32xf32>
    %383 = vector.broadcast %362 : vector<1x32xf32> to vector<16x32xf32>
    %384 = arith.mulf %382, %383 : vector<16x32xf32>
    %385 = vector.broadcast %364 : vector<1x32xf32> to vector<16x32xf32>
    %386 = arith.addf %384, %385 : vector<16x32xf32>
    %387 = vector.shape_cast %386 : vector<16x32xf32> to vector<2x8x32xf32>
    %388 = vector.extract_strided_slice %387 {offsets = [0, 0, 0], sizes = [2, 1, 32], strides = [1, 1, 1]} : vector<2x8x32xf32> to vector<2x1x32xf32>
    %389 = vector.shape_cast %388 : vector<2x1x32xf32> to vector<2x32xf32>
    %390 = arith.truncf %389 : vector<2x32xf32> to vector<2x32xbf16>
    %c0_156 = arith.constant 0 : index
    %c0_157 = arith.constant 0 : index
    %391 = vector.load %arg9[%c0_156, %c0_157] : memref<32x32xbf16, #tpu.memory_space<vmem>>, vector<32x32xbf16>
    %cst_158 = arith.constant dense<0.000000e+00> : vector<2x32xf32>
    %392 = tpu.matmul %390, %391, %cst_158 {dimension_numbers = #tpu.dot_dimension_numbers<[1], [0], [0], [1], [0, 0, 1, 1], [], []>} : vector<2x32xbf16>, vector<32x32xbf16>, vector<2x32xf32> -> vector<2x32xf32>
    %c2_159 = arith.constant 2 : index
    %c0_160 = arith.constant 0 : index
    %393 = vector.load %arg8[%c2_159, %c0_160] : memref<4x32xf32, #tpu.memory_space<vmem>>, vector<1x32xf32>
    %394 = vector.broadcast %393 : vector<1x32xf32> to vector<2x32xf32>
    %395 = arith.addf %392, %394 : vector<2x32xf32>
    %396 = math.tanh %395 : vector<2x32xf32>
    %397 = arith.truncf %396 : vector<2x32xf32> to vector<2x32xbf16>
    %c0_161 = arith.constant 0 : index
    %c0_162 = arith.constant 0 : index
    %398 = vector.load %arg10[%c0_161, %c0_162] : memref<32x3xbf16, #tpu.memory_space<vmem>>, vector<32x3xbf16>
    %cst_163 = arith.constant dense<0.000000e+00> : vector<2x3xf32>
    %399 = tpu.matmul %397, %398, %cst_163 {dimension_numbers = #tpu.dot_dimension_numbers<[1], [0], [0], [1], [0, 0, 1, 1], [], []>} : vector<2x32xbf16>, vector<32x3xbf16>, vector<2x3xf32> -> vector<2x3xf32>
    %c3_164 = arith.constant 3 : index
    %c0_165 = arith.constant 0 : index
    %400 = vector.load %arg8[%c3_164, %c0_165] : memref<4x32xf32, #tpu.memory_space<vmem>>, vector<1x3xf32>
    %401 = vector.broadcast %400 : vector<1x3xf32> to vector<2x3xf32>
    %402 = arith.addf %399, %401 : vector<2x3xf32>
    %c0_166 = arith.constant 0 : index
    %c0_167 = arith.constant 0 : index
    %403 = vector.load %arg11[%c0_166, %c0_167] : memref<2x3xf32, #tpu.memory_space<vmem>>, vector<2x3xf32>
    tpu.vector_store %arg11[%c0_166, %c0_167], %402 {strides = array<i32>} : memref<2x3xf32, #tpu.memory_space<vmem>>, vector<2x3xf32>,
    return
  }
}

</mosaic_0001>

<bundles_post_ra>
// kernel: custom_model_forward.1
= control target key start
LH: loop header
LB: loop body
LE: loop exit
PB: predicated region body
PF: predicated region fallthrough
CT: control target
= control target key end

     0   :  { %vm47_vm0 = vcmask 261120   ;;  %s2871_s0 = inlined_call_operand.vmem [shape: f32[2,8,32], index: 0, kind: input, shape index: {}]   ;;  %s2872_s1 = inlined_call_operand.vmem [shape: f32[8,32], index: 1, kind: input, shape index: {}]   ;;  %s2873_s2 = inlined_call_operand.vmem [shape: f32[2,1,8], index: 2, kind: input, shape index: {}]   ;;  %s2874_s3 = inlined_call_operand.vmem [shape: bf16[2,32,96], index: 3, kind: input, shape index: {}]   ;;  %s2875_s4 = inlined_call_operand.vmem [shape: bf16[2,32,32], index: 4, kind: input, shape index: {}]   ;;  %s2876_s5 = inlined_call_operand.vmem [shape: bf16[2,32,64], index: 5, kind: input, shape index: {}]   ;;  %s2877_s6 = inlined_call_operand.vmem [shape: bf16[2,64,32], index: 6, kind: input, shape index: {}]   ;;  %s2878_s7 = inlined_call_operand.vmem [shape: f32[2,8,96], index: 7, kind: input, shape index: {}]   ;;  %s2879_s8 = inlined_call_operand.vmem [shape: f32[4,32], index: 8, kind: input, shape index: {}]   ;;  %s2880_s9 = inlined_call_operand.vmem [shape: bf16[32,32], index: 9, kind: input, shape index: {}]   ;;  %s2881_s10 = inlined_call_operand.vmem [shape: bf16[32,3], index: 10, kind: input, shape index: {}]   ;;  %s2882_s11 = inlined_call_operand.hbm [shape: f32[2,3], index: 11, kind: output, shape index: {}]  }
   0x1   :  { %v40_v0 = vld [vmem:[%s2871_s0] sm:$0xff]  ;;  %v41_v2 = vld [vmem:[%s2871_s0 + $0x8] sm:$0xff] }
   0x2   :  { %v42_v1 = vld [vmem:[%s2872_s1] sm:$0xff] }
   0x3   :  { %v43_v3 = vadd.f32 %v42_v1, %v40_v0  ;;  %v44_v5 = vadd.f32 %v42_v1, %v41_v2 }
   0x5   :  { %v48_v4 = vsel %vm47_vm0, %v43_v3, 0.0  ;;  %v51_v6 = vsel %vm47_vm0, %v44_v5, 0.0 }
   0x6   :  { %49 = vadd.xlane.f32.xlu0 %v48_v4 }
   0x7   :  { %16 = vsyncpa [#allocation3], 0  ;;  %v2341_v7 = vmov 32.0   ;;  %v2103_v24 = vld [vmem:[%s2874_s3 + $0x8] sm:$0xff]  ;;  %v2102_v26 = vld [vmem:[%s2874_s3] sm:$0xff]  ;;  %s2342_s12 = smov 120  }
   0x8   :  { %2219 = vrcp.f32 %v2341_v7  ;;  %135 = vmatpush.bf16.msra.mxu0 %v2103_v24  ;;  %v2197_v45 = vld [vmem:[%s2879_s8] ss:$0 sm:$0xff]  ;;  %v2198_v50 = vld [vmem:[%s2879_s8 + $0x1] ss:$0 sm:$0xff]  ;;  %s2343_s13 = smov 88   ;;  %s2344_s14 = smov 96  }
   0x9   :  { %v2199_v55 = vld [vmem:[%s2878_s7] ss:$0 sm:$0xff]  ;;  %s2345_s15 = smov 112   ;;  %vm146_vm8 = vcmask 64512   ;;  %s2347_s20 = smov 56   ;;  %vm710_vm9 = vcmask 130048  }
   0xa   :  { %v2485_v0 = vld [vmem:[%s2873_s2] ss:$0 sm:$0xff]  ;;  %s2348_s21 = smov 80   ;;  %s2349_s22 = smov 72   ;;  %vm713_vm10 = vcmask 195584  }
   0xb   :  { %s2350_s0 = smov 104   ;;  %s2351_s1 = smov 40  }
   0xc   :  { %136 = vmatpush.bf16.msra.mxu0 %v2102_v26  ;;  %s2352_s23 = smov 48   ;;  %s2353_s24 = smov 8  }
   0xd   :  { %s2884_s25 = smov 16   ;;  %s2883_s26 = smov 24  }
   0xe   :  { %52 = vadd.xlane.f32.xlu0 %v51_v6  ;;  %v2220_v8 = vpop.eup %2219  ;;  %s2356_s19 = smov [#allocation2]  }
   0xf   :  { %v55_v9 = vmul.f32 32.0, %v2220_v8  ;;  %vm59_vm1 = vweird.f32 %v2220_v8  ;;  %s1909_s27 = sshll.u32 %s2356_s19, 4  ;;  %s1910_s27 = int_to_ptr.vmem [resolvable:$true] %s1909_s27 }
  0x11   :  { %v56_v10 = vsub.f32 1.0, %v55_v9 }
  0x13   :  { %v57_v11 = vmul.f32 %v2220_v8, %v56_v10 }
  0x15   :  { %v58_v12 = vadd.f32 %v2220_v8, %v57_v11 }
  0x17   :  { %v2428_v13 = vsel %vm59_vm1, %v2220_v8, %v58_v12 }
  0x79   :  { %v50_v14 = vpop.xlane.xlu0 %49 }
  0x7a   :  { %v61_v15 = vmul.f32 %v2428_v13, %v50_v14 }
  0x7c   :  { %v63_v16 = vsub.f32 %v43_v3, %v61_v15 }
  0x7e   :  { %v65_v17 = vmul.f32 %v63_v16, %v63_v16 }
  0x80   :  { %v67_v18 = vsel %vm47_vm0, %v65_v17, 0.0 }
  0x81   :  { %68 = vadd.xlane.f32.xlu1 %v67_v18  ;;  %v53_v19 = vpop.xlane.xlu0 %52 }
  0x82   :  { %v62_v20 = vmul.f32 %v2428_v13, %v53_v19 }
  0x84   :  { %v64_v21 = vsub.f32 %v44_v5, %v62_v20  ;;  %v2492_v5 = vld [vmem:[%s2873_s2 + $0x1] ss:$0 sm:$0xff]  ;;  %s2346_s2 = smov 64  }
  0x86   :  { %v66_v22 = vmul.f32 %v64_v21, %v64_v21 }
  0x88   :  { %v70_v23 = vsel %vm47_vm0, %v66_v22, 0.0 }
  0x89   :  { %71 = vadd.xlane.f32.xlu1 %v70_v23 }
  0xf4   :  { %v69_v25 = vpop.xlane.xlu1 %68 }
  0xf5   :  { %v73_v27 = vmul.f32 %v69_v25, %v2428_v13 }
  0xf7   :  { %v75_v28 = vadd.f32 1e-12, %v73_v27 }
  0xf9   :  { %2221 = vrsqrt.f32 %v75_v28  ;;  %vm83_vm3 = vweird.f32 %v75_v28 }
  0xfc   :  { %v72_v29 = vpop.xlane.xlu1 %71 }
  0xfd   :  { %v74_v30 = vmul.f32 %v72_v29, %v2428_v13 }
  0xff   :  { %v2222_v31 = vpop.eup %2221  ;;  %v76_v32 = vadd.f32 1e-12, %v74_v30 }
 0x100   :  { %v78_v33 = vmul.f32 %v2222_v31, %v75_v28  ;;  %vm84_vm2 = vweird.f32 %v2222_v31 }
 0x101   :  { %2223 = vrsqrt.f32 %v76_v32  ;;  %vm85_vm4 = vmor %vm83_vm3, %vm84_vm2  ;;  %vm93_vm6 = vweird.f32 %v76_v32  ;;  %vm895_vm2 = vcmask 523264  }
 0x102   :  { %v79_v34 = vmul.f32 %v2222_v31, %v78_v33 }
 0x104   :  { %v80_v35 = vmul.f32 0.5, %v79_v34 }
 0x106   :  { %v81_v36 = vsub.f32 1.5, %v80_v35 }
 0x107   :  { %v2224_v37 = vpop.eup %2223 }
 0x108   :  { %v82_v38 = vmul.f32 %v2222_v31, %v81_v36  ;;  %v88_v39 = vmul.f32 %v2224_v37, %v76_v32  ;;  %vm94_vm5 = vweird.f32 %v2224_v37 }
 0x109   :  { %vm95_vm7 = vmor %vm93_vm6, %vm94_vm5 }
 0x10a   :  { %v89_v40 = vmul.f32 %v2224_v37, %v88_v39  ;;  %v86_v41 = vsel %vm85_vm4, %v2222_v31, %v82_v38 }
 0x10b   :  { %v97_v44 = vmul.f32 %v86_v41, %v63_v16 }
 0x10c   :  { %v90_v42 = vmul.f32 0.5, %v89_v40 }
 0x10d   :  { %v100_v49 = vmul.f32 %v2197_v45, %v97_v44 }
 0x10e   :  { %v91_v43 = vsub.f32 1.5, %v90_v42 }
 0x10f   :  { %v2448_v52 = vadd.f32 %v2198_v50, %v100_v49 }
 0x110   :  { %v92_v46 = vmul.f32 %v2224_v37, %v91_v43 }
 0x112   :  { %v96_v47 = vsel %vm95_vm7, %v2224_v37, %v92_v46 }
 0x113   :  { %v98_v48 = vmul.f32 %v96_v47, %v64_v21 }
 0x115   :  { %v101_v51 = vmul.f32 %v2197_v45, %v98_v48 }
 0x117   :  { %v2450_v53 = vadd.f32 %v2198_v50, %v101_v51 }
 0x119   :  { %v107_v54 = vpack.c.bf16 %v2450_v53, %v2448_v52 }
 0x11b   :  { %1928 = vmatmul.msk.bf16.vlgmr.msra.gmra.mxu0 %vm47_vm0, %v107_v54 }
 0x198   :  { %v138_v56 = vpop.f32.mrf.mxu0 }
 0x199   :  { %v2458_v57 = vadd.f32 %v2199_v55, %v138_v56 }
 0x19b   :  { %282 = vrot.lane.b32.xlu1 %v2458_v57, %s2342_s12  ;;  %284 = vrot.lane.b32.xlu0 %v2458_v57, %s2343_s13 }
 0x19c   :  { %144 = vrot.lane.b32.xlu2 %v2458_v57, %s2344_s14 }
 0x1a0   :  { %v140_v58 = vpop.f32.mrf.mxu0 }
 0x1a1   :  { %v2466_v59 = vadd.f32 %v2199_v55, %v140_v58 }
 0x1a3   :  { %310 = vrot.lane.b32.xlu0 %v2466_v59, %s2342_s12  ;;  %v2500_v15 = vpack.i.bf16 %v2466_v59, %v2458_v57 }
 0x1a4   :  { %172 = vrot.lane.b32.xlu2 %v2466_v59, %s2344_s14 }
 0x1ab   :  { %416 = vrot.lane.b32.xlu0 %v2458_v57, %s2345_s15 }
 0x1f6   :  { %v145_v60 = vpop.permute.xlu2 %144 }
 0x1f7   :  { %1929 = vmatpush.xpose.msk.msra.mxu1 %vm146_vm8, %v145_v60 }
 0x1fa   :  { %1930 = vmatmul.msk.f32.vlgmr.msra.gmra.mxu1 %vm146_vm8, %v2458_v57 }
 0x1fe   :  { %v173_v61 = vpop.permute.xlu2 %172 }
 0x1ff   :  { %1931 = vmatpush.xpose.msk.msra.mxu2 %vm146_vm8, %v173_v61 }
 0x202   :  { %1932 = vmatmul.msk.f32.vlgmr.msra.gmra.mxu2 %vm146_vm8, %v2466_v59 }
 0x20d   :  { %v285_v62 = vpop.permute.xlu0 %284  ;;  %v283_v63 = vpop.permute.xlu1 %282 }
 0x20e   :  { %1935 = vmatpush.xpose.msk.msrb.mxu1 %vm146_vm8, %v285_v62 }
 0x211   :  { %1936 = vmatmul.msk.f32.vlgmr.msrb.gmra.mxu1 %vm146_vm8, %v283_v63 }
 0x215   :  { %v311_v16 = vpop.permute.xlu0 %310 }
 0x21d   :  { %v417_v20 = vpop.permute.xlu0 %416 }
 0x277   :  { %v168_v1 = vpop.f32.mrf.mxu1 }
 0x278   :  { %v198_v2 = vmul.f32 0.35355338, %v168_v1 }
 0x27a   :  { %v206_v3 = vadd.f32 %v2485_v0, %v198_v2 }
 0x27c   :  { %v208_v4 = vsel %vm146_vm8, %v206_v3, -inf }
 0x27d   :  { %209 = vmax.xlane.f32.xlu2 %v208_v4 }
 0x285   :  { %v195_v6 = vpop.f32.mrf.mxu2 }
 0x286   :  { %v199_v7 = vmul.f32 0.35355338, %v195_v6 }
 0x288   :  { %v207_v8 = vadd.f32 %v2492_v5, %v199_v7 }
 0x28a   :  { %v211_v9 = vsel %vm146_vm8, %v207_v8, -inf }
 0x28b   :  { %212 = vmax.xlane.f32.xlu0 %v211_v9 }
 0x28e   :  { %v307_v10 = vpop.f32.mrf.mxu1 }
 0x28f   :  { %v338_v11 = vmul.f32 0.35355338, %v307_v10 }
 0x291   :  { %v340_v12 = vadd.f32 %v2485_v0, %v338_v11 }
 0x293   :  { %v342_v14 = vsel %vm146_vm8, %v340_v12, -inf }
 0x294   :  { %343 = vmax.xlane.f32.xlu1 %v342_v14 }
 0x295   :  { %2143 = vrot.lane.b32.xlu2 %v2500_v15, %s2346_s2 }
 0x29d   :  { %364 = vrot.lane.b32.xlu2 %v2458_v57, %s2347_s20 }
 0x29f   :  { %444 = vrot.lane.b32.xlu0 %v2466_v59, %s2345_s15 }
 0x2a5   :  { %418 = vrot.lane.b32.xlu2 %v2458_v57, %s2348_s21 }
 0x2ad   :  { %552 = vrot.lane.b32.xlu2 %v2458_v57, %s2349_s22  ;;  %312 = vrot.lane.b32.xlu1 %v2466_v59, %s2343_s13 }
 0x2b5   :  { %446 = vrot.lane.b32.xlu1 %v2466_v59, %s2348_s21 }
 0x2bd   :  { %550 = vrot.lane.b32.xlu1 %v2458_v57, %s2350_s0 }
 0x2f0   :  { %v210_v17 = vpop.xlane.xlu2 %209 }
 0x2f1   :  { %v214_v18 = vsub.f32 %v206_v3, %v210_v17 }
 0x2f3   :  { %v216_v19 = vmul.f32 1.442695, %v214_v18 }
 0x2f5   :  { %2225 = vpow2.f32 %v216_v19 }
 0x2f8   :  { %v2144_v21 = vpop.permute.xlu2 %2143 }
 0x2f9   :  { %v2145_v22 = vunpack.i.l.bf16 %v2144_v21  ;;  %v2146_v23 = vunpack.i.h.bf16 %v2144_v21 }
 0x2fb   :  { %v2226_v24 = vpop.eup %2225  ;;  %251 = vmatpush.msra.mxu3 %v2145_v22 }
 0x2fc   :  { %v220_v25 = vsel %vm146_vm8, %v2226_v24, 0.0 }
 0x2fd   :  { %277 = vmatpush.msrb.mxu3 %v2146_v23  ;;  %221 = vadd.xlane.f32.xlu2 %v220_v25 }
 0x2fe   :  { %v213_v26 = vpop.xlane.xlu0 %212 }
 0x2ff   :  { %v215_v27 = vsub.f32 %v207_v8, %v213_v26 }
 0x300   :  { %v365_v34 = vpop.permute.xlu2 %364 }
 0x301   :  { %v218_v28 = vmul.f32 1.442695, %v215_v27 }
 0x303   :  { %2227 = vpow2.f32 %v218_v28 }
 0x307   :  { %v344_v29 = vpop.xlane.xlu1 %343 }
 0x308   :  { %v348_v30 = vsub.f32 %v340_v12, %v344_v29  ;;  %v419_v37 = vpop.permute.xlu2 %418 }
 0x309   :  { %v2228_v31 = vpop.eup %2227 }
 0x30a   :  { %v350_v32 = vmul.f32 1.442695, %v348_v30  ;;  %v223_v33 = vsel %vm146_vm8, %v2228_v31, 0.0 }
 0x30b   :  { %224 = vadd.xlane.f32.xlu2 %v223_v33 }
 0x30c   :  { %2229 = vpow2.f32 %v350_v32 }
 0x310   :  { %v553_v39 = vpop.permute.xlu2 %552 }
 0x311   :  { %v445_v46 = vpop.permute.xlu0 %444 }
 0x312   :  { %v2230_v35 = vpop.eup %2229 }
 0x313   :  { %v354_v36 = vsel %vm146_vm8, %v2230_v35, 0.0 }
 0x314   :  { %355 = vadd.xlane.f32.xlu0 %v354_v36 }
 0x31f   :  { %v313_v38 = vpop.permute.xlu1 %312 }
 0x320   :  { %1937 = vmatpush.xpose.msk.msrb.mxu2 %vm146_vm8, %v313_v38 }
 0x323   :  { %580 = vrot.lane.b32.xlu2 %v2466_v59, %s2349_s22  ;;  %1938 = vmatmul.msk.f32.vlgmr.msrb.gmra.mxu2 %vm146_vm8, %v311_v16 }
 0x324   :  { %1941 = vmatpush.xpose.msk.msra.mxu2 %vm146_vm8, %v419_v37 }
 0x327   :  { %v447_v40 = vpop.permute.xlu1 %446 }
 0x328   :  { %1947 = vmatpush.xpose.msk.msrb.mxu2 %vm146_vm8, %v553_v39  ;;  %578 = vrot.lane.b32.xlu0 %v2466_v59, %s2350_s0 }
 0x32b   :  { %1942 = vmatmul.msk.f32.vlgmr.msra.gmra.mxu2 %vm146_vm8, %v417_v20 }
 0x32f   :  { %v551_v41 = vpop.permute.xlu1 %550 }
 0x333   :  { %1948 = vmatmul.msk.f32.vlgmr.msrb.gmra.mxu2 %vm146_vm8, %v551_v41 }
 0x370   :  { %v222_v42 = vpop.xlane.xlu2 %221 }
 0x371   :  { %2231 = vrcp.f32 %v222_v42 }
 0x377   :  { %v2232_v43 = vpop.eup %2231 }
 0x378   :  { %v228_v44 = vmul.f32 %v2232_v43, %v2226_v24 }
 0x37a   :  { %1933 = vmatmul.msk.f32.vlgmr.msra.gmra.mxu3 %vm146_vm8, %v228_v44 }
 0x37b   :  { %385 = vmatpush.msra.mxu3 %v365_v34 }
 0x37e   :  { %v225_v45 = vpop.xlane.xlu2 %224 }
 0x37f   :  { %2233 = vrcp.f32 %v225_v45 }
 0x385   :  { %v2234_v47 = vpop.eup %2233 }
 0x386   :  { %v581_v48 = vpop.permute.xlu2 %580  ;;  %v229_v49 = vmul.f32 %v2234_v47, %v2228_v31 }
 0x387   :  { %1949 = vmatpush.xpose.msk.msrb.mxu0 %vm146_vm8, %v581_v48  ;;  %v356_v50 = vpop.xlane.xlu0 %355 }
 0x388   :  { %2235 = vrcp.f32 %v356_v50  ;;  %1934 = vmatmul.msk.f32.vlgmr.msrb.gmra.mxu3 %vm146_vm8, %v229_v49 }
 0x389   :  { %1943 = vmatpush.xpose.msk.msrb.mxu3 %vm146_vm8, %v447_v40 }
 0x38e   :  { %v2236_v51 = vpop.eup %2235 }
 0x38f   :  { %v362_v54 = vmul.f32 %v2236_v51, %v2230_v35 }
 0x391   :  { %1939 = vmatmul.msk.f32.vlgmr.msra.gmra.mxu3 %vm146_vm8, %v362_v54 }
 0x399   :  { %1944 = vmatmul.msk.f32.vlgmr.msrb.gmra.mxu3 %vm146_vm8, %v445_v46 }
 0x39a   :  { %v579_v55 = vpop.permute.xlu0 %578 }
 0x39b   :  { %1950 = vmatmul.msk.f32.vlgmr.msrb.gmra.mxu0 %vm146_vm8, %v579_v55 }
 0x3a6   :  { %v335_v56 = vpop.f32.mrf.mxu2 }
 0x3a7   :  { %v339_v58 = vmul.f32 0.35355338, %v335_v56 }
 0x3a9   :  { %v341_v60 = vadd.f32 %v2492_v5, %v339_v58 }
 0x3ab   :  { %v345_v61 = vsel %vm146_vm8, %v341_v60, -inf }
 0x3ac   :  { %346 = vmax.xlane.f32.xlu1 %v345_v61 }
 0x3ae   :  { %v441_v62 = vpop.f32.mrf.mxu2 }
 0x3af   :  { %v472_v63 = vmul.f32 0.35355338, %v441_v62 }
 0x3b1   :  { %v474_v1 = vadd.f32 %v2485_v0, %v472_v63 }
 0x3b3   :  { %v476_v2 = vsel %vm146_vm8, %v474_v1, -inf }
 0x3b4   :  { %477 = vmax.xlane.f32.xlu2 %v476_v2 }
 0x3b6   :  { %v575_v3 = vpop.f32.mrf.mxu2 }
 0x3b7   :  { %v606_v4 = vmul.f32 0.35355338, %v575_v3 }
 0x3b9   :  { %v608_v6 = vadd.f32 %v2485_v0, %v606_v4 }
 0x3bb   :  { %v610_v7 = vsel %vm146_vm8, %v608_v6, -inf }
 0x3bc   :  { %611 = vmax.xlane.f32.xlu1 %v610_v7 }
 0x3fd   :  { %v2544_v8 = vpop.f32.mrf.mxu3 }
 0x40b   :  { %v2546_v9 = vpop.f32.mrf.mxu3 }
 0x414   :  { %v2548_v10 = vpop.f32.mrf.mxu3 }
 0x418   :  { %v603_v11 = vpop.f32.mrf.mxu0 }
 0x419   :  { %v607_v12 = vmul.f32 0.35355338, %v603_v11 }
 0x41b   :  { %v609_v14 = vadd.f32 %v2492_v5, %v607_v12 }
 0x41c   :  { %v469_v16 = vpop.f32.mrf.mxu3 }
 0x41d   :  { %v473_v17 = vmul.f32 0.35355338, %v469_v16  ;;  %v613_v18 = vsel %vm146_vm8, %v609_v14, -inf }
 0x41e   :  { %614 = vmax.xlane.f32.xlu2 %v613_v18 }
 0x41f   :  { %v347_v19 = vpop.xlane.xlu1 %346  ;;  %v475_v20 = vadd.f32 %v2492_v5, %v473_v17 }
 0x420   :  { %v349_v21 = vsub.f32 %v341_v60, %v347_v19  ;;  %v2105_v19 = vld [vmem:[%s2875_s4 + $0x8] sm:$0xff] }
 0x421   :  { %v479_v22 = vsel %vm146_vm8, %v475_v20, -inf  ;;  %744 = vmatpush.bf16.msra.mxu2 %v2105_v19  ;;  %v2204_v19 = vld [vmem:[%s2878_s7 + $0x3] ss:$0 sm:$0xff] }
 0x422   :  { %v352_v23 = vmul.f32 1.442695, %v349_v21  ;;  %480 = vmax.xlane.f32.xlu0 %v479_v22 }
 0x424   :  { %2237 = vpow2.f32 %v352_v23 }
 0x427   :  { %v478_v24 = vpop.xlane.xlu2 %477 }
 0x428   :  { %v482_v25 = vsub.f32 %v474_v1, %v478_v24 }
 0x42a   :  { %v2238_v26 = vpop.eup %2237  ;;  %v484_v27 = vmul.f32 1.442695, %v482_v25 }
 0x42b   :  { %v357_v28 = vsel %vm146_vm8, %v2238_v26, 0.0 }
 0x42c   :  { %2239 = vpow2.f32 %v484_v27  ;;  %358 = vadd.xlane.f32.xlu0 %v357_v28 }
 0x42f   :  { %v612_v29 = vpop.xlane.xlu1 %611 }
 0x430   :  { %v616_v30 = vsub.f32 %v608_v6, %v612_v29 }
 0x432   :  { %v2240_v31 = vpop.eup %2239  ;;  %v618_v32 = vmul.f32 1.442695, %v616_v30 }
 0x433   :  { %v488_v33 = vsel %vm146_vm8, %v2240_v31, 0.0 }
 0x434   :  { %2241 = vpow2.f32 %v618_v32  ;;  %489 = vadd.xlane.f32.xlu1 %v488_v33 }
 0x43a   :  { %v2242_v34 = vpop.eup %2241 }
 0x43b   :  { %v622_v35 = vsel %vm146_vm8, %v2242_v34, 0.0 }
 0x43c   :  { %623 = vadd.xlane.f32.xlu1 %v622_v35 }
 0x440   :  { %390 = vrot.lane.b32.xlu0 %v2466_v59, %s2347_s20 }
 0x448   :  { %658 = vrot.lane.b32.xlu0 %v2466_v59, %s2351_s1 }
 0x491   :  { %v615_v36 = vpop.xlane.xlu2 %614 }
 0x492   :  { %v617_v37 = vsub.f32 %v609_v14, %v615_v36 }
 0x494   :  { %v620_v38 = vmul.f32 1.442695, %v617_v37 }
 0x495   :  { %v481_v39 = vpop.xlane.xlu0 %480 }
 0x496   :  { %2243 = vpow2.f32 %v620_v38  ;;  %v483_v40 = vsub.f32 %v475_v20, %v481_v39 }
 0x498   :  { %v486_v41 = vmul.f32 1.442695, %v483_v40 }
 0x49a   :  { %2245 = vpow2.f32 %v486_v41 }
 0x49c   :  { %v2244_v42 = vpop.eup %2243 }
 0x49d   :  { %v625_v43 = vsel %vm146_vm8, %v2244_v42, 0.0 }
 0x49e   :  { %626 = vadd.xlane.f32.xlu1 %v625_v43 }
 0x49f   :  { %v359_v46 = vpop.xlane.xlu0 %358 }
 0x4a0   :  { %v2246_v44 = vpop.eup %2245  ;;  %2247 = vrcp.f32 %v359_v46 }
 0x4a1   :  { %v491_v45 = vsel %vm146_vm8, %v2246_v44, 0.0 }
 0x4a2   :  { %492 = vadd.xlane.f32.xlu2 %v491_v45 }
 0x4a6   :  { %v2248_v47 = vpop.eup %2247 }
 0x4a7   :  { %v363_v59 = vmul.f32 %v2248_v47, %v2238_v26  ;;  %v490_v49 = vpop.xlane.xlu1 %489 }
 0x4a8   :  { %2249 = vrcp.f32 %v490_v49 }
 0x4ae   :  { %v2250_v54 = vpop.eup %2249 }
 0x4af   :  { %v624_v50 = vpop.xlane.xlu1 %623  ;;  %v496_v62 = vmul.f32 %v2250_v54, %v2240_v31 }
 0x4b2   :  { %v391_v48 = vpop.permute.xlu0 %390 }
 0x4b3   :  { %411 = vmatpush.msra.mxu1 %v391_v48 }
 0x4b4   :  { %1940 = vmatmul.msk.f32.vlgmr.msra.gmra.mxu1 %vm146_vm8, %v363_v59 }
 0x4b7   :  { %632 = vrot.lane.b32.xlu1 %v2458_v57, %s2351_s1 }
 0x4ba   :  { %2148 = vrot.lane.b32.xlu2 %v2500_v15, %s2352_s23  ;;  %v659_v57 = vpop.permute.xlu0 %658 }
 0x511   :  { %v627_v55 = vpop.xlane.xlu1 %626 }
 0x515   :  { %v493_v51 = vpop.xlane.xlu2 %492 }
 0x516   :  { %2251 = vrcp.f32 %v493_v51  ;;  %v2107_v51 = vld [vmem:[%s2876_s5 + $0x8] sm:$0xff] }
 0x517   :  { %2253 = vrcp.f32 %v627_v55  ;;  %834 = vmatpush.bf16.msra.mxu0 %v2107_v51 }
 0x518   :  { %2255 = vrcp.f32 %v624_v50 }
 0x51c   :  { %v2252_v56 = vpop.eup %2251 }
 0x51d   :  { %v2149_v58 = vpop.permute.xlu2 %2148  ;;  %v497_v63 = vmul.f32 %v2252_v56, %v2246_v44  ;;  %v2254_v15 = vpop.eup %2253  ;;  %v2106_v56 = vld [vmem:[%s2876_s5] sm:$0xff] }
 0x51e   :  { %v2151_v60 = vunpack.i.h.bf16 %v2149_v58  ;;  %v2150_v61 = vunpack.i.l.bf16 %v2149_v58  ;;  %v2256_v1 = vpop.eup %2255  ;;  %v631_v2 = vmul.f32 %v2254_v15, %v2244_v42  ;;  %835 = vmatpush.bf16.msra.mxu0 %v2106_v56 }
 0x51f   :  { %v630_v3 = vmul.f32 %v2256_v1, %v2242_v34 }
 0x520   :  { %519 = vmatpush.msra.mxu3 %v2150_v61  ;;  %545 = vmatpush.msrb.mxu1 %v2151_v60 }
 0x521   :  { %1945 = vmatmul.msk.f32.vlgmr.msra.gmra.mxu3 %vm146_vm8, %v496_v62  ;;  %1946 = vmatmul.msk.f32.vlgmr.msrb.gmra.mxu1 %vm146_vm8, %v497_v63 }
 0x522   :  { %679 = vmatpush.msra.mxu1 %v659_v57 }
 0x529   :  { %v633_v4 = vpop.permute.xlu1 %632  ;;  %1952 = vmatmul.msk.f32.vlgmr.msra.gmra.mxu1 %vm146_vm8, %v631_v2 }
 0x52a   :  { %653 = vmatpush.msrb.mxu3 %v633_v4 }
 0x52b   :  { %1951 = vmatmul.msk.f32.vlgmr.msrb.gmra.mxu3 %vm146_vm8, %v630_v3 }
 0x531   :  { %v413_v6 = vpop.f32.mrf.mxu1 }
 0x532   :  { %v2152_v7 = vpack.i.bf16 %v413_v6, %v2548_v10  ;;  %v2104_v10 = vld [vmem:[%s2875_s4] sm:$0xff] }
 0x533   :  { %745 = vmatpush.bf16.msra.mxu2 %v2104_v10 }
 0x534   :  { %2153 = vrot.lane.b32.xlu0 %v2152_v7, %s2353_s24 }
 0x59e   :  { %v547_v11 = vpop.f32.mrf.mxu1 }
 0x5a4   :  { %v521_v12 = vpop.f32.mrf.mxu3 }
 0x5a5   :  { %v2157_v14 = vpack.i.bf16 %v547_v11, %v521_v12 }
 0x5a6   :  { %v681_v16 = vpop.f32.mrf.mxu1  ;;  %v2154_v20 = vpop.permute.xlu0 %2153 }
 0x5a7   :  { %2158 = vrot.lane.b32.xlu2 %v2157_v14, %s2884_s25  ;;  %v2156_v22 = vunpack.i.h.bf16 %v2154_v20  ;;  %v2155_v23 = vunpack.i.l.bf16 %v2154_v20  ;;  %v2203_v14 = vld [vmem:[%s2878_s7 + $0x2] ss:$0 sm:$0xff] }
 0x5a9   :  { %v709_v27 = vsel %vm146_vm8, %v2546_v9, %v2156_v22  ;;  %v708_v28 = vsel %vm146_vm8, %v2544_v8, %v2155_v23  ;;  %v2202_v9 = vld [vmem:[%s2878_s7 + $0x1] ss:$0 sm:$0xff] }
 0x5ae   :  { %v655_v17 = vpop.f32.mrf.mxu3 }
 0x5af   :  { %v2162_v18 = vpack.i.bf16 %v681_v16, %v655_v17 }
 0x5b1   :  { %2163 = vrot.lane.b32.xlu0 %v2162_v18, %s2883_s26 }
 0x601   :  { %v2159_v21 = vpop.permute.xlu2 %2158 }
 0x602   :  { %v2161_v24 = vunpack.i.h.bf16 %v2159_v21  ;;  %v2160_v25 = vunpack.i.l.bf16 %v2159_v21 }
 0x604   :  { %v711_v31 = vsel %vm710_vm9, %v708_v28, %v2160_v25  ;;  %v712_v32 = vsel %vm710_vm9, %v709_v27, %v2161_v24  ;;  %v2111_v25 = vld [vmem:[%s2877_s6 + $0x18] sm:$0xff]  ;;  %v2109_v27 = vld [vmem:[%s2877_s6 + $0x8] sm:$0xff]  ;;  %v2205_v28 = vld [vmem:[%s2878_s7 + $0x4] ss:$0 sm:$0xff] }
 0x605   :  { %903 = vmatpush.bf16.msra.mxu3 %v2111_v25 }
 0x623   :  { %v2164_v26 = vpop.permute.xlu0 %2163 }
 0x624   :  { %v2166_v29 = vunpack.i.h.bf16 %v2164_v26  ;;  %v2165_v30 = vunpack.i.l.bf16 %v2164_v26  ;;  %v2110_v26 = vld [vmem:[%s2877_s6 + $0x10] sm:$0xff] }
 0x625   :  { %904 = vmatpush.bf16.msra.mxu3 %v2110_v26 }
 0x626   :  { %v714_v33 = vsel %vm713_vm10, %v711_v31, %v2165_v30  ;;  %v715_v34 = vsel %vm713_vm10, %v712_v32, %v2166_v29  ;;  %v2108_v29 = vld [vmem:[%s2877_s6] sm:$0xff] }
 0x627   :  { %v716_v35 = vpack.c.bf16 %v715_v34, %v714_v33 }
 0x629   :  { %1961 = vmatmul.msk.bf16.vlgmr.msra.gmra.mxu2 %vm47_vm0, %v716_v35  ;;  %905 = vmatpush.bf16.msra.mxu3 %v2109_v27 }
 0x62d   :  { %906 = vmatpush.bf16.msra.mxu3 %v2108_v29 }
 0x6ac   :  { %v747_v36 = vpop.f32.mrf.mxu2 }
 0x6ad   :  { %v748_v37 = vadd.f32 %v2202_v9, %v747_v36 }
 0x6af   :  { %v752_v8 = vadd.f32 %v748_v37, %v2448_v52 }
 0x6b1   :  { %v756_v38 = vsel %vm47_vm0, %v752_v8, 0.0 }
 0x6b2   :  { %757 = vadd.xlane.f32.xlu2 %v756_v38 }
 0x6b4   :  { %v749_v39 = vpop.f32.mrf.mxu2 }
 0x6b5   :  { %v750_v40 = vadd.f32 %v2202_v9, %v749_v39 }
 0x6b7   :  { %v753_v41 = vadd.f32 %v750_v40, %v2450_v53 }
 0x6b9   :  { %v759_v42 = vsel %vm47_vm0, %v753_v41, 0.0 }
 0x6ba   :  { %760 = vadd.xlane.f32.xlu1 %v759_v42 }
 0x725   :  { %v758_v43 = vpop.xlane.xlu2 %757 }
 0x726   :  { %v762_v44 = vmul.f32 %v758_v43, %v2428_v13 }
 0x728   :  { %v764_v45 = vsub.f32 %v752_v8, %v762_v44 }
 0x72a   :  { %v766_v46 = vmul.f32 %v764_v45, %v764_v45 }
 0x72c   :  { %v768_v47 = vsel %vm47_vm0, %v766_v46, 0.0 }
 0x72d   :  { %v761_v59 = vpop.xlane.xlu1 %760  ;;  %769 = vadd.xlane.f32.xlu0 %v768_v47 }
 0x72e   :  { %v763_v52 = vmul.f32 %v761_v59, %v2428_v13 }
 0x730   :  { %v765_v48 = vsub.f32 %v753_v41, %v763_v52 }
 0x732   :  { %v767_v49 = vmul.f32 %v765_v48, %v765_v48 }
 0x734   :  { %v771_v50 = vsel %vm47_vm0, %v767_v49, 0.0  ;;  %v2206_v49 = vld [vmem:[%s2878_s7 + $0x5] ss:$0 sm:$0xff] }
 0x735   :  { %772 = vadd.xlane.f32.xlu2 %v771_v50 }
 0x7a0   :  { %v770_v53 = vpop.xlane.xlu0 %769 }
 0x7a1   :  { %v774_v54 = vmul.f32 %v770_v53, %v2428_v13 }
 0x7a3   :  { %v776_v55 = vadd.f32 1e-12, %v774_v54 }
 0x7a5   :  { %2257 = vrsqrt.f32 %v776_v55  ;;  %vm784_vm12 = vweird.f32 %v776_v55 }
 0x7a8   :  { %v773_v58 = vpop.xlane.xlu2 %772 }
 0x7a9   :  { %v775_v60 = vmul.f32 %v773_v58, %v2428_v13 }
 0x7ab   :  { %v2258_v61 = vpop.eup %2257  ;;  %v777_v62 = vadd.f32 1e-12, %v775_v60 }
 0x7ac   :  { %v779_v63 = vmul.f32 %v2258_v61, %v776_v55  ;;  %vm785_vm11 = vweird.f32 %v2258_v61 }
 0x7ad   :  { %2259 = vrsqrt.f32 %v777_v62  ;;  %vm786_vm13 = vmor %vm784_vm12, %vm785_vm11  ;;  %vm794_vm15 = vweird.f32 %v777_v62 }
 0x7ae   :  { %v780_v57 = vmul.f32 %v2258_v61, %v779_v63 }
 0x7b0   :  { %v781_v15 = vmul.f32 0.5, %v780_v57 }
 0x7b2   :  { %v782_v1 = vsub.f32 1.5, %v781_v15 }
 0x7b3   :  { %v2260_v2 = vpop.eup %2259 }
 0x7b4   :  { %v783_v3 = vmul.f32 %v2258_v61, %v782_v1  ;;  %v789_v4 = vmul.f32 %v2260_v2, %v777_v62  ;;  %vm795_vm14 = vweird.f32 %v2260_v2 }
 0x7b5   :  { %vm796_vm1 = vmor %vm794_vm15, %vm795_vm14 }
 0x7b6   :  { %v790_v6 = vmul.f32 %v2260_v2, %v789_v4  ;;  %v787_v7 = vsel %vm786_vm13, %v2258_v61, %v783_v3 }
 0x7b7   :  { %v798_v16 = vmul.f32 %v787_v7, %v764_v45 }
 0x7b8   :  { %v791_v11 = vmul.f32 0.5, %v790_v6 }
 0x7b9   :  { %v801_v10 = vmul.f32 %v2203_v14, %v798_v16  ;;  %v2112_v16 = vld [vmem:[%s2874_s3 + $0x10] sm:$0xff] }
 0x7ba   :  { %v792_v12 = vsub.f32 1.5, %v791_v11  ;;  %v2113_v11 = vld [vmem:[%s2874_s3 + $0x18] sm:$0xff]  ;;  %s1911_s3 = sshll.u32 %s2882_s11, 4  ;;  %s1912_s3 = int_to_ptr.hbm [resolvable:$true] %s1911_s3 }
 0x7bb   :  { %v804_v22 = vadd.f32 %v2204_v19, %v801_v10  ;;  %997 = vmatpush.bf16.msrb.mxu1 %v2113_v11 }
 0x7bc   :  { %v793_v17 = vmul.f32 %v2260_v2, %v792_v12 }
 0x7be   :  { %v797_v18 = vsel %vm796_vm1, %v2260_v2, %v793_v17 }
 0x7bf   :  { %v799_v20 = vmul.f32 %v797_v18, %v765_v48  ;;  %998 = vmatpush.bf16.msrb.mxu1 %v2112_v16 }
 0x7c1   :  { %v802_v21 = vmul.f32 %v2203_v14, %v799_v20 }
 0x7c3   :  { %v805_v23 = vadd.f32 %v2204_v19, %v802_v21 }
 0x7c5   :  { %v806_v24 = vpack.c.bf16 %v805_v23, %v804_v22 }
 0x7c7   :  { %1970 = vmatmul.msk.bf16.vlgmr.msra.gmra.mxu0 %vm47_vm0, %v806_v24 }
 0x844   :  { %v837_v30 = vpop.f32.mrf.mxu0 }
 0x845   :  { %v838_v31 = vadd.f32 %v2205_v28, %v837_v30 }
 0x847   :  { %v844_v32 = vmul.f32 0.044715, %v838_v31  ;;  %v842_v45 = vmul.f32 0.5, %v838_v31 }
 0x849   :  { %v846_v33 = vmul.f32 %v844_v32, %v838_v31 }
 0x84b   :  { %v848_v34 = vmul.f32 %v846_v33, %v838_v31 }
 0x84c   :  { %v839_v35 = vpop.f32.mrf.mxu0 }
 0x84d   :  { %v850_v9 = vadd.f32 %v848_v34, %v838_v31  ;;  %v840_v36 = vadd.f32 %v2205_v28, %v839_v35  ;;  %v2207_v31 = vld [vmem:[%s2878_s7 + $0x6] ss:$0 sm:$0xff]  ;;  %v2208_v35 = vld [vmem:[%s2878_s7 + $0x7] ss:$0 sm:$0xff] }
 0x84f   :  { %v845_v37 = vmul.f32 0.044715, %v840_v36  ;;  %v852_v8 = vmul.f32 0.7978846, %v850_v9  ;;  %v843_v46 = vmul.f32 0.5, %v840_v36 }
 0x851   :  { %v847_v38 = vmul.f32 %v845_v37, %v840_v36  ;;  %2261 = vtanh.f32 %v852_v8 }
 0x853   :  { %v849_v39 = vmul.f32 %v847_v38, %v840_v36 }
 0x855   :  { %v851_v40 = vadd.f32 %v849_v39, %v840_v36 }
 0x857   :  { %v853_v41 = vmul.f32 0.7978846, %v851_v40  ;;  %v2262_v42 = vpop.eup %2261  ;;  %v2209_v40 = vld [vmem:[%s2878_s7 + $0x8] ss:$0 sm:$0xff] }
 0x858   :  { %v856_v43 = vadd.f32 1.0, %v2262_v42 }
 0x859   :  { %2263 = vtanh.f32 %v853_v41 }
 0x85a   :  { %v858_v59 = vmul.f32 %v856_v43, %v842_v45 }
 0x85f   :  { %v2264_v44 = vpop.eup %2263 }
 0x860   :  { %v857_v47 = vadd.f32 1.0, %v2264_v44 }
 0x862   :  { %v859_v52 = vmul.f32 %v857_v47, %v843_v46 }
 0x864   :  { %v860_v48 = vpack.c.bf16 %v859_v52, %v858_v59 }
 0x866   :  { %1987 = vmatmul.msk.bf16.vlgmr.msra.gmra.mxu3 %vm895_vm2, %v860_v48 }
 0x8e9   :  { %v908_v50 = vpop.f32.mrf.mxu3 }
 0x8ea   :  { %v909_v53 = vadd.f32 %v2206_v49, %v908_v50 }
 0x8ec   :  { %v913_v51 = vadd.f32 %v909_v53, %v804_v22 }
 0x8ee   :  { %v917_v54 = vsel %vm47_vm0, %v913_v51, 0.0 }
 0x8ef   :  { %918 = vadd.xlane.f32.xlu1 %v917_v54 }
 0x8f1   :  { %v910_v55 = vpop.f32.mrf.mxu3 }
 0x8f2   :  { %v911_v56 = vadd.f32 %v2206_v49, %v910_v55 }
 0x8f4   :  { %v914_v58 = vadd.f32 %v911_v56, %v805_v23 }
 0x8f6   :  { %v920_v60 = vsel %vm47_vm0, %v914_v58, 0.0 }
 0x8f7   :  { %921 = vadd.xlane.f32.xlu0 %v920_v60 }
 0x962   :  { %v919_v61 = vpop.xlane.xlu1 %918 }
 0x963   :  { %v923_v62 = vmul.f32 %v919_v61, %v2428_v13 }
 0x965   :  { %v925_v63 = vsub.f32 %v913_v51, %v923_v62 }
 0x967   :  { %v927_v57 = vmul.f32 %v925_v63, %v925_v63 }
 0x969   :  { %v929_v15 = vsel %vm47_vm0, %v927_v57, 0.0 }
 0x96a   :  { %v922_v1 = vpop.xlane.xlu0 %921  ;;  %930 = vadd.xlane.f32.xlu2 %v929_v15 }
 0x96b   :  { %v924_v2 = vmul.f32 %v922_v1, %v2428_v13 }
 0x96d   :  { %v926_v3 = vsub.f32 %v914_v58, %v924_v2 }
 0x96f   :  { %v928_v4 = vmul.f32 %v926_v3, %v926_v3 }
 0x971   :  { %v932_v6 = vsel %vm47_vm0, %v928_v4, 0.0 }
 0x972   :  { %933 = vadd.xlane.f32.xlu1 %v932_v6 }
 0x9dd   :  { %v931_v7 = vpop.xlane.xlu2 %930 }
 0x9de   :  { %v935_v12 = vmul.f32 %v931_v7, %v2428_v13 }
 0x9e0   :  { %v937_v14 = vadd.f32 1e-12, %v935_v12 }
 0x9e2   :  { %2265 = vrsqrt.f32 %v937_v14  ;;  %vm945_vm4 = vweird.f32 %v937_v14 }
 0x9e5   :  { %v934_v17 = vpop.xlane.xlu1 %933 }
 0x9e6   :  { %v936_v18 = vmul.f32 %v934_v17, %v2428_v13 }
 0x9e8   :  { %v2266_v19 = vpop.eup %2265  ;;  %v938_v10 = vadd.f32 1e-12, %v936_v18 }
 0x9e9   :  { %v940_v20 = vmul.f32 %v2266_v19, %v937_v14  ;;  %vm946_vm3 = vweird.f32 %v2266_v19 }
 0x9ea   :  { %2267 = vrsqrt.f32 %v938_v10  ;;  %vm947_vm5 = vmor %vm945_vm4, %vm946_vm3  ;;  %vm955_vm7 = vweird.f32 %v938_v10 }
 0x9eb   :  { %v941_v21 = vmul.f32 %v2266_v19, %v940_v20 }
 0x9ed   :  { %v942_v22 = vmul.f32 0.5, %v941_v21 }
 0x9ef   :  { %v943_v23 = vsub.f32 1.5, %v942_v22 }
 0x9f0   :  { %v2268_v24 = vpop.eup %2267 }
 0x9f1   :  { %v944_v25 = vmul.f32 %v2266_v19, %v943_v23  ;;  %v950_v26 = vmul.f32 %v2268_v24, %v938_v10  ;;  %vm956_vm6 = vweird.f32 %v2268_v24 }
 0x9f2   :  { %vm957_vm11 = vmor %vm955_vm7, %vm956_vm6  ;;  %vm1835_vm6 = vcmask 1041409   ;;  %vm1902_vm7 = vcmask 17408  }
 0x9f3   :  { %v951_v27 = vmul.f32 %v2268_v24, %v950_v26  ;;  %v948_v28 = vsel %vm947_vm5, %v2266_v19, %v944_v25 }
 0x9f4   :  { %v959_v32 = vmul.f32 %v948_v28, %v925_v63 }
 0x9f5   :  { %v952_v29 = vmul.f32 0.5, %v951_v27 }
 0x9f6   :  { %v962_v9 = vmul.f32 %v2207_v31, %v959_v32 }
 0x9f7   :  { %v953_v30 = vsub.f32 1.5, %v952_v29 }
 0x9f8   :  { %v2656_v8 = vadd.f32 %v2208_v35, %v962_v9 }
 0x9f9   :  { %v954_v33 = vmul.f32 %v2268_v24, %v953_v30 }
 0x9fb   :  { %v958_v34 = vsel %vm957_vm11, %v2268_v24, %v954_v33 }
 0x9fc   :  { %v960_v36 = vmul.f32 %v958_v34, %v926_v3 }
 0x9fe   :  { %v963_v37 = vmul.f32 %v2207_v31, %v960_v36 }
 0xa00   :  { %v2658_v38 = vadd.f32 %v2208_v35, %v963_v37 }
 0xa02   :  { %v967_v39 = vpack.c.bf16 %v2658_v38, %v2656_v8 }
 0xa04   :  { %2001 = vmatmul.msk.bf16.vlgmr.msrb.gmra.mxu1 %vm47_vm0, %v967_v39 }
 0xa81   :  { %v1000_v41 = vpop.f32.mrf.mxu1 }
 0xa82   :  { %v2666_v42 = vadd.f32 %v2209_v40, %v1000_v41 }
 0xa84   :  { %1006 = vrot.lane.b32.xlu0 %v2666_v42, %s2344_s14 }
 0xa89   :  { %v1002_v43 = vpop.f32.mrf.mxu1 }
 0xa8a   :  { %v2670_v44 = vadd.f32 %v2209_v40, %v1002_v43 }
 0xa8c   :  { %1167 = vrot.lane.b32.xlu1 %v2670_v44, %s2343_s13  ;;  %1033 = vrot.lane.b32.xlu2 %v2670_v44, %s2344_s14  ;;  %v2167_v32 = vpack.i.bf16 %v2666_v42, %v2670_v44 }
 0xa8d   :  { %1165 = vrot.lane.b32.xlu0 %v2670_v44, %s2342_s12 }
 0xa94   :  { %1301 = vrot.lane.b32.xlu2 %v2670_v44, %s2348_s21  ;;  %1139 = vrot.lane.b32.xlu1 %v2666_v42, %s2343_s13  ;;  %s2886_s13 = smov 24  }
 0xa95   :  { %1299 = vrot.lane.b32.xlu0 %v2670_v44, %s2345_s15 }
 0xa9c   :  { %1137 = vrot.lane.b32.xlu2 %v2666_v42, %s2342_s12  ;;  %1433 = vrot.lane.b32.xlu1 %v2670_v44, %s2350_s0  ;;  %s2885_s12 = smov 16  }
 0xa9d   :  { %1435 = vrot.lane.b32.xlu0 %v2670_v44, %s2349_s22 }
 0xaa4   :  { %1273 = vrot.lane.b32.xlu2 %v2666_v42, %s2348_s21  ;;  %1407 = vrot.lane.b32.xlu1 %v2666_v42, %s2349_s22 }
 0xaa5   :  { %1271 = vrot.lane.b32.xlu0 %v2666_v42, %s2345_s15 }
 0xaac   :  { %1405 = vrot.lane.b32.xlu2 %v2666_v42, %s2350_s0 }
 0xae6   :  { %v1034_v45 = vpop.permute.xlu2 %1033 }
 0xae7   :  { %2004 = vmatpush.xpose.msk.msrb.mxu0 %vm146_vm8, %v1034_v45 }
 0xaea   :  { %2005 = vmatmul.msk.f32.vlgmr.msrb.gmra.mxu0 %vm146_vm8, %v2670_v44 }
 0xaee   :  { %v1302_v46 = vpop.permute.xlu2 %1301 }
 0xaf6   :  { %v1007_v47 = vpop.permute.xlu0 %1006  ;;  %v1138_v59 = vpop.permute.xlu2 %1137 }
 0xaf7   :  { %2002 = vmatpush.xpose.msk.msrb.mxu2 %vm146_vm8, %v1007_v47 }
 0xafa   :  { %2003 = vmatmul.msk.f32.vlgmr.msrb.gmra.mxu2 %vm146_vm8, %v2666_v42 }
 0xafe   :  { %v1168_v52 = vpop.permute.xlu1 %1167  ;;  %v1274_v50 = vpop.permute.xlu2 %1273 }
 0xaff   :  { %v1166_v48 = vpop.permute.xlu0 %1165  ;;  %2010 = vmatpush.xpose.msk.msrb.mxu3 %vm146_vm8, %v1168_v52 }
 0xb02   :  { %2011 = vmatmul.msk.f32.vlgmr.msrb.gmra.mxu3 %vm146_vm8, %v1166_v48 }
 0xb03   :  { %2016 = vmatpush.xpose.msk.msra.mxu3 %vm146_vm8, %v1302_v46 }
 0xb06   :  { %v1140_v49 = vpop.permute.xlu1 %1139  ;;  %v1406_v58 = vpop.permute.xlu2 %1405 }
 0xb07   :  { %v1300_v53 = vpop.permute.xlu0 %1299  ;;  %2008 = vmatpush.xpose.msk.msra.mxu0 %vm146_vm8, %v1140_v49 }
 0xb0a   :  { %2009 = vmatmul.msk.f32.vlgmr.msra.gmra.mxu0 %vm146_vm8, %v1138_v59  ;;  %2017 = vmatmul.msk.f32.vlgmr.msra.gmra.mxu3 %vm146_vm8, %v1300_v53 }
 0xb0b   :  { %2014 = vmatpush.xpose.msk.msrb.mxu0 %vm146_vm8, %v1274_v50 }
 0xb0e   :  { %v1434_v51 = vpop.permute.xlu1 %1433 }
 0xb0f   :  { %v1436_v54 = vpop.permute.xlu0 %1435 }
 0xb10   :  { %2022 = vmatpush.xpose.msk.msrb.mxu3 %vm146_vm8, %v1436_v54 }
 0xb13   :  { %2023 = vmatmul.msk.f32.vlgmr.msrb.gmra.mxu3 %vm146_vm8, %v1434_v51 }
 0xb16   :  { %v1408_v55 = vpop.permute.xlu1 %1407 }
 0xb17   :  { %v1272_v56 = vpop.permute.xlu0 %1271  ;;  %2020 = vmatpush.xpose.msk.msra.mxu0 %vm146_vm8, %v1408_v55 }
 0xb18   :  { %2015 = vmatmul.msk.f32.vlgmr.msrb.gmra.mxu0 %vm146_vm8, %v1272_v56 }
 0xb20   :  { %2021 = vmatmul.msk.f32.vlgmr.msra.gmra.mxu0 %vm146_vm8, %v1406_v58 }
 0xb67   :  { %v1056_v60 = vpop.f32.mrf.mxu0 }
 0xb68   :  { %v1060_v61 = vmul.f32 0.35355338, %v1056_v60 }
 0xb6a   :  { %v1062_v62 = vadd.f32 %v2492_v5, %v1060_v61 }
 0xb6c   :  { %v1066_v63 = vsel %vm146_vm8, %v1062_v62, -inf }
 0xb6d   :  { %1067 = vmax.xlane.f32.xlu0 %v1066_v63 }
 0xb7d   :  { %v1029_v57 = vpop.f32.mrf.mxu2 }
 0xb7e   :  { %v1059_v15 = vmul.f32 0.35355338, %v1029_v57 }
 0xb80   :  { %v1061_v1 = vadd.f32 %v2485_v0, %v1059_v15 }
 0xb82   :  { %v1063_v2 = vsel %vm146_vm8, %v1061_v1, -inf }
 0xb83   :  { %1064 = vmax.xlane.f32.xlu1 %v1063_v2 }
 0xb85   :  { %v1190_v3 = vpop.f32.mrf.mxu3 }
 0xb86   :  { %v1194_v4 = vmul.f32 0.35355338, %v1190_v3 }
 0xb87   :  { %v1162_v6 = vpop.f32.mrf.mxu0 }
 0xb88   :  { %v1193_v7 = vmul.f32 0.35355338, %v1162_v6  ;;  %v1196_v11 = vadd.f32 %v2492_v5, %v1194_v4 }
 0xb8a   :  { %v1200_v12 = vsel %vm146_vm8, %v1196_v11, -inf  ;;  %v1195_v14 = vadd.f32 %v2485_v0, %v1193_v7 }
 0xb8b   :  { %1201 = vmax.xlane.f32.xlu2 %v1200_v12 }
 0xb8c   :  { %v1197_v16 = vsel %vm146_vm8, %v1195_v14, -inf }
 0xb8d   :  { %1198 = vmax.xlane.f32.xlu0 %v1197_v16  ;;  %v1324_v17 = vpop.f32.mrf.mxu3 }
 0xb8e   :  { %v1328_v18 = vmul.f32 0.35355338, %v1324_v17 }
 0xb90   :  { %v1330_v19 = vadd.f32 %v2492_v5, %v1328_v18 }
 0xb92   :  { %v1334_v10 = vsel %vm146_vm8, %v1330_v19, -inf }
 0xb93   :  { %1335 = vmax.xlane.f32.xlu1 %v1334_v10 }
 0xb95   :  { %v1296_v20 = vpop.f32.mrf.mxu0 }
 0xb96   :  { %v1327_v21 = vmul.f32 0.35355338, %v1296_v20  ;;  %v1458_v22 = vpop.f32.mrf.mxu3 }
 0xb97   :  { %v1462_v23 = vmul.f32 0.35355338, %v1458_v22 }
 0xb98   :  { %v1329_v24 = vadd.f32 %v2485_v0, %v1327_v21 }
 0xb99   :  { %v1464_v25 = vadd.f32 %v2492_v5, %v1462_v23 }
 0xb9a   :  { %v1331_v26 = vsel %vm146_vm8, %v1329_v24, -inf }
 0xb9b   :  { %1332 = vmax.xlane.f32.xlu2 %v1331_v26  ;;  %v1468_v27 = vsel %vm146_vm8, %v1464_v25, -inf }
 0xb9c   :  { %1469 = vmax.xlane.f32.xlu0 %v1468_v27 }
 0xb9d   :  { %v1430_v28 = vpop.f32.mrf.mxu0 }
 0xb9e   :  { %v1461_v29 = vmul.f32 0.35355338, %v1430_v28 }
 0xba0   :  { %v2731_v30 = vadd.f32 %v2485_v0, %v1461_v29 }
 0xba2   :  { %v1465_v31 = vsel %vm146_vm8, %v2731_v30, -inf }
 0xba3   :  { %1466 = vmax.xlane.f32.xlu1 %v1465_v31 }
 0xbb3   :  { %2168 = vrot.lane.b32.xlu2 %v2167_v32, %s2346_s2 }
 0xbe0   :  { %v1068_v5 = vpop.xlane.xlu0 %1067 }
 0xbe1   :  { %v1070_v33 = vsub.f32 %v1062_v62, %v1068_v5 }
 0xbe3   :  { %v1073_v34 = vmul.f32 1.442695, %v1070_v33 }
 0xbe5   :  { %2269 = vpow2.f32 %v1073_v34 }
 0xbeb   :  { %v2738_v35 = vpop.eup %2269 }
 0xbec   :  { %v1078_v9 = vsel %vm146_vm8, %v2738_v35, 0.0 }
 0xbed   :  { %1079 = vadd.xlane.f32.xlu2 %v1078_v9 }
 0xbf6   :  { %v1065_v0 = vpop.xlane.xlu1 %1064 }
 0xbf7   :  { %v1069_v36 = vsub.f32 %v1061_v1, %v1065_v0 }
 0xbf9   :  { %v1071_v37 = vmul.f32 1.442695, %v1069_v36 }
 0xbfb   :  { %2271 = vpow2.f32 %v1071_v37 }
 0xbfe   :  { %v1202_v39 = vpop.xlane.xlu2 %1201 }
 0xbff   :  { %v1204_v40 = vsub.f32 %v1196_v11, %v1202_v39 }
 0xc00   :  { %v1199_v41 = vpop.xlane.xlu0 %1198 }
 0xc01   :  { %v2272_v43 = vpop.eup %2271  ;;  %v1207_v45 = vmul.f32 1.442695, %v1204_v40  ;;  %v1203_v46 = vsub.f32 %v1195_v14, %v1199_v41 }
 0xc02   :  { %v1075_v47 = vsel %vm146_vm8, %v2272_v43, 0.0 }
 0xc03   :  { %2273 = vpow2.f32 %v1207_v45  ;;  %v1205_v59 = vmul.f32 1.442695, %v1203_v46  ;;  %1076 = vadd.xlane.f32.xlu0 %v1075_v47 }
 0xc05   :  { %2275 = vpow2.f32 %v1205_v59  ;;  %2178 = vrot.lane.b32.xlu2 %v2167_v32, %s2352_s23 }
 0xc06   :  { %v1336_v52 = vpop.xlane.xlu1 %1335 }
 0xc07   :  { %v1338_v48 = vsub.f32 %v1330_v19, %v1336_v52 }
 0xc09   :  { %v2744_v49 = vpop.eup %2273  ;;  %v1341_v50 = vmul.f32 1.442695, %v1338_v48 }
 0xc0a   :  { %v1212_v53 = vsel %vm146_vm8, %v2744_v49, 0.0 }
 0xc0b   :  { %v2276_v51 = vpop.eup %2275  ;;  %2277 = vpow2.f32 %v1341_v50  ;;  %1213 = vadd.xlane.f32.xlu1 %v1212_v53 }
 0xc0c   :  { %v1209_v54 = vsel %vm146_vm8, %v2276_v51, 0.0 }
 0xc0d   :  { %1487 = vrot.lane.b32.xlu2 %v2666_v42, %s2351_s1  ;;  %1210 = vadd.xlane.f32.xlu0 %v1209_v54 }
 0xc0e   :  { %v1333_v55 = vpop.xlane.xlu2 %1332 }
 0xc0f   :  { %v1337_v56 = vsub.f32 %v1329_v24, %v1333_v55  ;;  %v1470_v58 = vpop.xlane.xlu0 %1469 }
 0xc10   :  { %v1472_v62 = vsub.f32 %v1464_v25, %v1470_v58  ;;  %v2115_v58 = vld [vmem:[%s2875_s4 + $0x18] sm:$0xff] }
 0xc11   :  { %v2751_v60 = vpop.eup %2277  ;;  %v1339_v61 = vmul.f32 1.442695, %v1337_v56  ;;  %1598 = vmatpush.bf16.msrb.mxu0 %v2115_v58 }
 0xc12   :  { %v1346_v63 = vsel %vm146_vm8, %v2751_v60, 0.0  ;;  %v1475_v57 = vmul.f32 1.442695, %v1472_v62 }
 0xc13   :  { %2279 = vpow2.f32 %v1339_v61  ;;  %1347 = vadd.xlane.f32.xlu1 %v1346_v63 }
 0xc14   :  { %2281 = vpow2.f32 %v1475_v57 }
 0xc16   :  { %v2169_v15 = vpop.permute.xlu2 %2168  ;;  %v1467_v7 = vpop.xlane.xlu1 %1466 }
 0xc17   :  { %v2171_v1 = vunpack.i.h.bf16 %v2169_v15  ;;  %v2170_v2 = vunpack.i.l.bf16 %v2169_v15  ;;  %v1471_v11 = vsub.f32 %v2731_v30, %v1467_v7 }
 0xc19   :  { %v2280_v3 = vpop.eup %2279  ;;  %1106 = vmatpush.msra.mxu1 %v2171_v1  ;;  %1132 = vmatpush.msra.mxu2 %v2170_v2  ;;  %v1473_v12 = vmul.f32 1.442695, %v1471_v11 }
 0xc1a   :  { %v1343_v42 = vsel %vm146_vm8, %v2280_v3, 0.0  ;;  %v2282_v4 = vpop.eup %2281 }
 0xc1b   :  { %1344 = vadd.xlane.f32.xlu1 %v1343_v42  ;;  %v1480_v6 = vsel %vm146_vm8, %v2282_v4, 0.0  ;;  %2283 = vpow2.f32 %v1473_v12 }
 0xc21   :  { %2173 = vrot.lane.b32.xlu0 %v2167_v32, %s2347_s20  ;;  %v2284_v14 = vpop.eup %2283 }
 0xc22   :  { %v1477_v16 = vsel %vm146_vm8, %v2284_v14, 0.0 }
 0xc23   :  { %1481 = vadd.xlane.f32.xlu1 %v1480_v6 }
 0xc3c   :  { %1513 = vrot.lane.b32.xlu1 %v2670_v44, %s2351_s1 }
 0xc4b   :  { %1478 = vadd.xlane.f32.xlu0 %v1477_v16 }
 0xc60   :  { %v1080_v17 = vpop.xlane.xlu2 %1079 }
 0xc61   :  { %2285 = vrcp.f32 %v1080_v17  ;;  %v2210_v17 = vld [vmem:[%s2878_s7 + $0x9] ss:$0 sm:$0xff] }
 0xc67   :  { %v2286_v18 = vpop.eup %2285 }
 0xc68   :  { %v1084_v19 = vmul.f32 %v2286_v18, %v2738_v35  ;;  %v2179_v24 = vpop.permute.xlu2 %2178 }
 0xc69   :  { %v2181_v5 = vunpack.i.h.bf16 %v2179_v24  ;;  %v2180_v33 = vunpack.i.l.bf16 %v2179_v24 }
 0xc6a   :  { %2007 = vmatmul.msk.f32.vlgmr.msra.gmra.mxu2 %vm146_vm8, %v1084_v19 }
 0xc70   :  { %v1488_v34 = vpop.permute.xlu2 %1487 }
 0xc76   :  { %v1077_v10 = vpop.xlane.xlu0 %1076 }
 0xc77   :  { %2287 = vrcp.f32 %v1077_v10 }
 0xc7d   :  { %v2288_v20 = vpop.eup %2287 }
 0xc7e   :  { %v1083_v21 = vmul.f32 %v2288_v20, %v2272_v43  ;;  %v1214_v22 = vpop.xlane.xlu1 %1213 }
 0xc7f   :  { %2289 = vrcp.f32 %v1214_v22 }
 0xc80   :  { %2006 = vmatmul.msk.f32.vlgmr.msra.gmra.mxu1 %vm146_vm8, %v1083_v21  ;;  %v1211_v23 = vpop.xlane.xlu0 %1210 }
 0xc81   :  { %2291 = vrcp.f32 %v1211_v23 }
 0xc85   :  { %v2290_v25 = vpop.eup %2289 }
 0xc86   :  { %v1348_v44 = vpop.xlane.xlu1 %1347  ;;  %v1218_v31 = vmul.f32 %v2290_v25, %v2744_v49 }
 0xc87   :  { %v2292_v27 = vpop.eup %2291  ;;  %2293 = vrcp.f32 %v1348_v44 }
 0xc88   :  { %v1217_v32 = vmul.f32 %v2292_v27, %v2276_v51 }
 0xc8d   :  { %v2294_v35 = vpop.eup %2293 }
 0xc8e   :  { %v1345_v26 = vpop.xlane.xlu1 %1344  ;;  %v1352_v0 = vmul.f32 %v2294_v35, %v2751_v60  ;;  %v2114_v60 = vld [vmem:[%s2875_s4 + $0x10] sm:$0xff] }
 0xc8f   :  { %2295 = vrcp.f32 %v1345_v26  ;;  %1599 = vmatpush.bf16.msrb.mxu0 %v2114_v60  ;;  %v2116_v35 = vld [vmem:[%s2876_s5 + $0x10] sm:$0xff] }
 0xc93   :  { %v2174_v28 = vpop.permute.xlu0 %2173 }
 0xc94   :  { %v2176_v29 = vunpack.i.h.bf16 %v2174_v28  ;;  %v2175_v30 = vunpack.i.l.bf16 %v2174_v28 }
 0xc95   :  { %v2296_v9 = vpop.eup %2295 }
 0xc96   :  { %1240 = vmatpush.msrb.mxu1 %v2176_v29  ;;  %1266 = vmatpush.msrb.mxu2 %v2175_v30  ;;  %v1351_v36 = vmul.f32 %v2296_v9, %v2280_v3  ;;  %v1482_v37 = vpop.xlane.xlu1 %1481 }
 0xc97   :  { %2012 = vmatmul.msk.f32.vlgmr.msrb.gmra.mxu1 %vm146_vm8, %v1217_v32  ;;  %2013 = vmatmul.msk.f32.vlgmr.msrb.gmra.mxu2 %vm146_vm8, %v1218_v31  ;;  %2297 = vrcp.f32 %v1482_v37 }
 0xc98   :  { %1374 = vmatpush.msra.mxu1 %v2181_v5  ;;  %1400 = vmatpush.msra.mxu2 %v2180_v33  ;;  %v2117_v5 = vld [vmem:[%s2876_s5 + $0x18] sm:$0xff] }
 0xc99   :  { %1689 = vmatpush.bf16.msra.mxu3 %v2117_v5 }
 0xc9a   :  { %1508 = vmatpush.msrb.mxu1 %v1488_v34 }
 0xc9d   :  { %v2298_v39 = vpop.eup %2297  ;;  %1690 = vmatpush.bf16.msra.mxu3 %v2116_v35 }
 0xc9e   :  { %v1486_v40 = vmul.f32 %v2298_v39, %v2282_v4 }
 0xc9f   :  { %2018 = vmatmul.msk.f32.vlgmr.msra.gmra.mxu1 %vm146_vm8, %v1351_v36  ;;  %2019 = vmatmul.msk.f32.vlgmr.msra.gmra.mxu2 %vm146_vm8, %v1352_v0 }
 0xcae   :  { %v1514_v41 = vpop.permute.xlu1 %1513 }
 0xcaf   :  { %1534 = vmatpush.msrb.mxu2 %v1514_v41 }
 0xcb0   :  { %2025 = vmatmul.msk.f32.vlgmr.msrb.gmra.mxu2 %vm146_vm8, %v1486_v40 }
 0xcbe   :  { %v1479_v43 = vpop.xlane.xlu0 %1478 }
 0xcbf   :  { %2299 = vrcp.f32 %v1479_v43 }
 0xcc5   :  { %v2300_v45 = vpop.eup %2299 }
 0xcc6   :  { %v1485_v46 = vmul.f32 %v2300_v45, %v2284_v14 }
 0xcc8   :  { %2024 = vmatmul.msk.f32.vlgmr.msrb.gmra.mxu1 %vm146_vm8, %v1485_v46 }
 0xced   :  { %v1134_v59 = vpop.f32.mrf.mxu2 }
 0xcfd   :  { %v1108_v47 = vpop.f32.mrf.mxu1 }
 0xd14   :  { %v1242_v52 = vpop.f32.mrf.mxu1 }
 0xd1a   :  { %v1268_v48 = vpop.f32.mrf.mxu2 }
 0xd1b   :  { %v2182_v49 = vpack.i.bf16 %v1268_v48, %v1242_v52 }
 0xd1c   :  { %v1376_v50 = vpop.f32.mrf.mxu1 }
 0xd1d   :  { %2183 = vrot.lane.b32.xlu2 %v2182_v49, %s2353_s24 }
 0xd22   :  { %v1402_v53 = vpop.f32.mrf.mxu2 }
 0xd23   :  { %v2187_v51 = vpack.i.bf16 %v1402_v53, %v1376_v50  ;;  %v2211_v50 = vld [vmem:[%s2878_s7 + $0xa] ss:$0 sm:$0xff] }
 0xd25   :  { %2188 = vrot.lane.b32.xlu2 %v2187_v51, %s2885_s12 }
 0xd33   :  { %v1536_v54 = vpop.f32.mrf.mxu2 }
 0xd45   :  { %v1510_v55 = vpop.f32.mrf.mxu1 }
 0xd46   :  { %v2192_v56 = vpack.i.bf16 %v1536_v54, %v1510_v55  ;;  %v2212_v55 = vld [vmem:[%s2878_s7 + $0xb] ss:$0 sm:$0xff] }
 0xd48   :  { %2193 = vrot.lane.b32.xlu2 %v2192_v56, %s2886_s13 }
 0xd77   :  { %v2184_v61 = vpop.permute.xlu2 %2183 }
 0xd78   :  { %v2186_v63 = vunpack.i.h.bf16 %v2184_v61  ;;  %v2185_v57 = vunpack.i.l.bf16 %v2184_v61 }
 0xd7a   :  { %v1564_v3 = vsel %vm146_vm8, %v1134_v59, %v2186_v63  ;;  %v1563_v42 = vsel %vm146_vm8, %v1108_v47, %v2185_v57  ;;  %v2121_v57 = vld [vmem:[%s2877_s6 + $0x38] sm:$0xff] }
 0xd7b   :  { %1758 = vmatpush.bf16.msra.mxu1 %v2121_v57  ;;  %v2215_v57 = vld [vmem:[%s2878_s7 + $0xe] ss:$0 sm:$0xff] }
 0xd7f   :  { %v2189_v62 = vpop.permute.xlu2 %2188 }
 0xd80   :  { %v2191_v15 = vunpack.i.h.bf16 %v2189_v62  ;;  %v2190_v1 = vunpack.i.l.bf16 %v2189_v62 }
 0xd82   :  { %v1566_v7 = vsel %vm710_vm9, %v1564_v3, %v2191_v15  ;;  %v1565_v11 = vsel %vm710_vm9, %v1563_v42, %v2190_v1  ;;  %v2120_v15 = vld [vmem:[%s2877_s6 + $0x30] sm:$0xff]  ;;  %v2119_v1 = vld [vmem:[%s2877_s6 + $0x28] sm:$0xff]  ;;  %v2118_v3 = vld [vmem:[%s2877_s6 + $0x20] sm:$0xff] }
 0xd83   :  { %1759 = vmatpush.bf16.msra.mxu1 %v2120_v15 }
 0xd87   :  { %1760 = vmatpush.bf16.msra.mxu1 %v2119_v1  ;;  %v2216_v1 = vld [vmem:[%s2878_s7 + $0xf] ss:$0 sm:$0xff] }
 0xd8b   :  { %1761 = vmatpush.bf16.msra.mxu1 %v2118_v3 }
 0xda2   :  { %v2194_v2 = vpop.permute.xlu2 %2193 }
 0xda3   :  { %v2196_v4 = vunpack.i.h.bf16 %v2194_v2  ;;  %v2195_v6 = vunpack.i.l.bf16 %v2194_v2  ;;  %v2213_v2 = vld [vmem:[%s2878_s7 + $0xc] ss:$0 sm:$0xff] }
 0xda5   :  { %v1568_v12 = vsel %vm713_vm10, %v1566_v7, %v2196_v4  ;;  %v1567_v14 = vsel %vm713_vm10, %v1565_v11, %v2195_v6 }
 0xda6   :  { %v1569_v16 = vpack.c.bf16 %v1568_v12, %v1567_v14 }
 0xda8   :  { %2039 = vmatmul.msk.bf16.vlgmr.msrb.gmra.mxu0 %vm47_vm0, %v1569_v16 }
 0xe25   :  { %v1601_v18 = vpop.f32.mrf.mxu0 }
 0xe26   :  { %v1602_v19 = vadd.f32 %v2210_v17, %v1601_v18 }
 0xe28   :  { %v1606_v10 = vadd.f32 %v1602_v19, %v2656_v8 }
 0xe2a   :  { %v1610_v20 = vsel %vm47_vm0, %v1606_v10, 0.0 }
 0xe2b   :  { %1611 = vadd.xlane.f32.xlu1 %v1610_v20 }
 0xe2d   :  { %v1603_v21 = vpop.f32.mrf.mxu0 }
 0xe2e   :  { %v1604_v22 = vadd.f32 %v2210_v17, %v1603_v21 }
 0xe30   :  { %v1607_v44 = vadd.f32 %v1604_v22, %v2658_v38 }
 0xe32   :  { %v1613_v23 = vsel %vm47_vm0, %v1607_v44, 0.0 }
 0xe33   :  { %1614 = vadd.xlane.f32.xlu2 %v1613_v23 }
 0xe9e   :  { %v1612_v24 = vpop.xlane.xlu1 %1611 }
 0xe9f   :  { %v1616_v25 = vmul.f32 %v1612_v24, %v2428_v13 }
 0xea1   :  { %v1618_v26 = vsub.f32 %v1606_v10, %v1616_v25 }
 0xea3   :  { %v1620_v27 = vmul.f32 %v1618_v26, %v1618_v26 }
 0xea5   :  { %v1622_v28 = vsel %vm47_vm0, %v1620_v27, 0.0 }
 0xea6   :  { %v1615_v29 = vpop.xlane.xlu2 %1614  ;;  %1623 = vadd.xlane.f32.xlu0 %v1622_v28 }
 0xea7   :  { %v1617_v8 = vmul.f32 %v1615_v29, %v2428_v13 }
 0xea9   :  { %v1619_v30 = vsub.f32 %v1607_v44, %v1617_v8 }
 0xeab   :  { %v1621_v31 = vmul.f32 %v1619_v30, %v1619_v30 }
 0xead   :  { %v1625_v32 = vsel %vm47_vm0, %v1621_v31, 0.0 }
 0xeae   :  { %1626 = vadd.xlane.f32.xlu0 %v1625_v32 }
 0xf19   :  { %v1624_v38 = vpop.xlane.xlu0 %1623 }
 0xf1a   :  { %v1628_v33 = vmul.f32 %v1624_v38, %v2428_v13 }
 0xf1c   :  { %v1630_v34 = vadd.f32 1e-12, %v1628_v33 }
 0xf1e   :  { %2301 = vrsqrt.f32 %v1630_v34  ;;  %vm1638_vm9 = vweird.f32 %v1630_v34 }
 0xf21   :  { %v1627_v9 = vpop.xlane.xlu0 %1626 }
 0xf22   :  { %v1629_v0 = vmul.f32 %v1627_v9, %v2428_v13 }
 0xf24   :  { %v2302_v36 = vpop.eup %2301  ;;  %v1631_v37 = vadd.f32 1e-12, %v1629_v0 }
 0xf25   :  { %v1633_v39 = vmul.f32 %v2302_v36, %v1630_v34  ;;  %vm1639_vm8 = vweird.f32 %v2302_v36 }
 0xf26   :  { %2303 = vrsqrt.f32 %v1631_v37  ;;  %vm1640_vm10 = vmor %vm1638_vm9, %vm1639_vm8  ;;  %vm1648_vm13 = vweird.f32 %v1631_v37 }
 0xf27   :  { %v1634_v40 = vmul.f32 %v2302_v36, %v1633_v39 }
 0xf29   :  { %v1635_v41 = vmul.f32 0.5, %v1634_v40 }
 0xf2b   :  { %v1636_v43 = vsub.f32 1.5, %v1635_v41 }
 0xf2c   :  { %v2304_v45 = vpop.eup %2303 }
 0xf2d   :  { %v1637_v46 = vmul.f32 %v2302_v36, %v1636_v43  ;;  %v1643_v47 = vmul.f32 %v2304_v45, %v1631_v37  ;;  %vm1649_vm12 = vweird.f32 %v2304_v45 }
 0xf2e   :  { %vm1650_vm14 = vmor %vm1648_vm13, %vm1649_vm12 }
 0xf2f   :  { %v1644_v59 = vmul.f32 %v2304_v45, %v1643_v47  ;;  %v1641_v52 = vsel %vm1640_vm10, %v2302_v36, %v1637_v46 }
 0xf30   :  { %v1652_v53 = vmul.f32 %v1641_v52, %v1618_v26 }
 0xf31   :  { %v1645_v48 = vmul.f32 0.5, %v1644_v59 }
 0xf32   :  { %v1655_v56 = vmul.f32 %v2211_v50, %v1652_v53 }
 0xf33   :  { %v1646_v49 = vsub.f32 1.5, %v1645_v48  ;;  %v2123_v48 = vld [vmem:[%s2880_s9 + $0x8] sm:$0xff] }
 0xf34   :  { %v1658_v61 = vadd.f32 %v2212_v55, %v1655_v56  ;;  %1859 = vmatpush.bf16.msra.mxu2 %v2123_v48 }
 0xf35   :  { %v1647_v51 = vmul.f32 %v2304_v45, %v1646_v49  ;;  %v2122_v49 = vld [vmem:[%s2880_s9] sm:$0xff] }
 0xf37   :  { %v1651_v54 = vsel %vm1650_vm14, %v2304_v45, %v1647_v51 }
 0xf38   :  { %v1653_v58 = vmul.f32 %v1651_v54, %v1619_v30  ;;  %v2214_v30 = vld [vmem:[%s2878_s7 + $0xd] ss:$0 sm:$0xff]  ;;  %1860 = vmatpush.bf16.msra.mxu2 %v2122_v49 }
 0xf3a   :  { %v1656_v60 = vmul.f32 %v2211_v50, %v1653_v58 }
 0xf3c   :  { %v1659_v62 = vadd.f32 %v2212_v55, %v1656_v60 }
 0xf3e   :  { %v1660_v63 = vpack.c.bf16 %v1659_v62, %v1658_v61 }
 0xf40   :  { %2055 = vmatmul.msk.bf16.vlgmr.msra.gmra.mxu3 %vm47_vm0, %v1660_v63 }
 0xfc3   :  { %v1692_v42 = vpop.f32.mrf.mxu3 }
 0xfc4   :  { %v1693_v4 = vadd.f32 %v2213_v2, %v1692_v42 }
 0xfc6   :  { %v1699_v6 = vmul.f32 0.044715, %v1693_v4  ;;  %v1697_v24 = vmul.f32 0.5, %v1693_v4 }
 0xfc8   :  { %v1701_v7 = vmul.f32 %v1699_v6, %v1693_v4 }
 0xfca   :  { %v1703_v11 = vmul.f32 %v1701_v7, %v1693_v4 }
 0xfcb   :  { %v1694_v12 = vpop.f32.mrf.mxu3 }
 0xfcc   :  { %v1705_v14 = vadd.f32 %v1703_v11, %v1693_v4  ;;  %v1695_v16 = vadd.f32 %v2213_v2, %v1694_v12 }
 0xfce   :  { %v1700_v17 = vmul.f32 0.044715, %v1695_v16  ;;  %v1707_v18 = vmul.f32 0.7978846, %v1705_v14  ;;  %v1698_v25 = vmul.f32 0.5, %v1695_v16 }
 0xfd0   :  { %v1702_v19 = vmul.f32 %v1700_v17, %v1695_v16  ;;  %2305 = vtanh.f32 %v1707_v18 }
 0xfd2   :  { %v1704_v10 = vmul.f32 %v1702_v19, %v1695_v16 }
 0xfd4   :  { %v1706_v20 = vadd.f32 %v1704_v10, %v1695_v16 }
 0xfd6   :  { %v1708_v21 = vmul.f32 0.7978846, %v1706_v20  ;;  %v2306_v22 = vpop.eup %2305 }
 0xfd7   :  { %v1711_v44 = vadd.f32 1.0, %v2306_v22 }
 0xfd8   :  { %2307 = vtanh.f32 %v1708_v21 }
 0xfd9   :  { %v1713_v27 = vmul.f32 %v1711_v44, %v1697_v24  ;;  %v2125_v44 = vld [vmem:[%s2881_s10 + $0x8] sm:$0xff]  ;;  %v2217_v24 = vld [vmem:[%s2879_s8 + $0x2] ss:$0 sm:$0xff] }
 0xfda   :  { %1895 = vmatpush.bf16.msra.mxu0 %v2125_v44 }
 0xfde   :  { %v2308_v23 = vpop.eup %2307 }
 0xfdf   :  { %v1712_v26 = vadd.f32 1.0, %v2308_v23  ;;  %v2124_v23 = vld [vmem:[%s2881_s10] sm:$0xff] }
 0xfe0   :  { %1896 = vmatpush.bf16.msra.mxu0 %v2124_v23 }
 0xfe1   :  { %v1714_v28 = vmul.f32 %v1712_v26, %v1698_v25 }
 0xfe3   :  { %v1715_v29 = vpack.c.bf16 %v1714_v28, %v1713_v27 }
 0xfe5   :  { %2081 = vmatmul.msk.bf16.vlgmr.msra.gmra.mxu1 %vm895_vm2, %v1715_v29 }
0x1062   :  { %v1763_v8 = vpop.f32.mrf.mxu1 }
0x1063   :  { %v1764_v5 = vadd.f32 %v2214_v30, %v1763_v8  ;;  %v2218_v8 = vld [vmem:[%s2879_s8 + $0x3] ss:$0 sm:$0xff] }
0x1065   :  { %v1768_v34 = vadd.f32 %v1764_v5, %v1658_v61 }
0x1067   :  { %v1772_v35 = vsel %vm47_vm0, %v1768_v34, 0.0 }
0x106a   :  { %v1765_v31 = vpop.f32.mrf.mxu1 }
0x106b   :  { %v1766_v32 = vadd.f32 %v2214_v30, %v1765_v31 }
0x106d   :  { %v1769_v38 = vadd.f32 %v1766_v32, %v1659_v62 }
0x106f   :  { %v1775_v33 = vsel %vm47_vm0, %v1769_v38, 0.0 }
0x1070   :  { %1776 = vadd.xlane.f32.xlu0 %v1775_v33 }
0x1078   :  { %1773 = vadd.xlane.f32.xlu0 %v1772_v35 }
0x10e3   :  { %v1777_v9 = vpop.xlane.xlu0 %1776 }
0x10e4   :  { %v1779_v0 = vmul.f32 %v1777_v9, %v2428_v13 }
0x10e6   :  { %v1781_v36 = vsub.f32 %v1769_v38, %v1779_v0 }
0x10e8   :  { %v1783_v37 = vmul.f32 %v1781_v36, %v1781_v36 }
0x10ea   :  { %v1787_v39 = vsel %vm47_vm0, %v1783_v37, 0.0 }
0x10eb   :  { %1788 = vadd.xlane.f32.xlu1 %v1787_v39  ;;  %v1774_v40 = vpop.xlane.xlu0 %1773 }
0x10ec   :  { %v1778_v41 = vmul.f32 %v1774_v40, %v2428_v13 }
0x10ee   :  { %v1780_v43 = vsub.f32 %v1768_v34, %v1778_v41 }
0x10f0   :  { %v1782_v45 = vmul.f32 %v1780_v43, %v1780_v43 }
0x10f2   :  { %v1784_v46 = vsel %vm47_vm0, %v1782_v45, 0.0 }
0x10f3   :  { %1785 = vadd.xlane.f32.xlu2 %v1784_v46 }
0x115e   :  { %v1789_v47 = vpop.xlane.xlu1 %1788 }
0x115f   :  { %v1791_v59 = vmul.f32 %v1789_v47, %v2428_v13 }
0x1161   :  { %v1793_v52 = vadd.f32 1e-12, %v1791_v59 }
0x1163   :  { %2309 = vrsqrt.f32 %v1793_v52  ;;  %vm1810_vm1 = vweird.f32 %v1793_v52 }
0x1166   :  { %v1786_v50 = vpop.xlane.xlu2 %1785 }
0x1167   :  { %v1790_v53 = vmul.f32 %v1786_v50, %v2428_v13 }
0x1169   :  { %v2310_v51 = vpop.eup %2309  ;;  %v1792_v54 = vadd.f32 1e-12, %v1790_v53 }
0x116a   :  { %v1805_v55 = vmul.f32 %v2310_v51, %v1793_v52  ;;  %vm1811_vm15 = vweird.f32 %v2310_v51 }
0x116b   :  { %2311 = vrsqrt.f32 %v1792_v54  ;;  %vm1812_vm2 = vmor %vm1810_vm1, %vm1811_vm15  ;;  %vm1800_vm4 = vweird.f32 %v1792_v54 }
0x116c   :  { %v1806_v56 = vmul.f32 %v2310_v51, %v1805_v55 }
0x116e   :  { %v1807_v58 = vmul.f32 0.5, %v1806_v56 }
0x1170   :  { %v1808_v60 = vsub.f32 1.5, %v1807_v58 }
0x1171   :  { %v2312_v61 = vpop.eup %2311 }
0x1172   :  { %v1809_v62 = vmul.f32 %v2310_v51, %v1808_v60  ;;  %v1795_v63 = vmul.f32 %v2312_v61, %v1792_v54  ;;  %vm1801_vm3 = vweird.f32 %v2312_v61 }
0x1173   :  { %vm1802_vm5 = vmor %vm1800_vm4, %vm1801_vm3 }
0x1174   :  { %v1813_v15 = vsel %vm1812_vm2, %v2310_v51, %v1809_v62  ;;  %v1796_v13 = vmul.f32 %v2312_v61, %v1795_v63 }
0x1175   :  { %v1815_v2 = vmul.f32 %v1813_v15, %v1781_v36 }
0x1176   :  { %v1797_v3 = vmul.f32 0.5, %v1796_v13 }
0x1177   :  { %v1818_v42 = vmul.f32 %v2215_v57, %v1815_v2 }
0x1178   :  { %v1798_v4 = vsub.f32 1.5, %v1797_v3 }
0x1179   :  { %v1821_v6 = vadd.f32 %v2216_v1, %v1818_v42 }
0x117a   :  { %v1799_v7 = vmul.f32 %v2312_v61, %v1798_v4 }
0x117b   :  { %v1823_v12 = vpack.c.bf16 %v1821_v6, %v1821_v6 }
0x117c   :  { %v1803_v11 = vsel %vm1802_vm5, %v2312_v61, %v1799_v7 }
0x117d   :  { %v1814_v14 = vmul.f32 %v1803_v11, %v1780_v43  ;;  %v1833_v17 = vunpack.c.l.b16 %v1823_v12 }
0x117f   :  { %v1817_v16 = vmul.f32 %v2215_v57, %v1814_v14  ;;  %v1834_v10 = vrot.slane %v1833_v17, 7 }
0x1181   :  { %v1820_v18 = vadd.f32 %v2216_v1, %v1817_v16 }
0x1183   :  { %v1822_v19 = vpack.c.bf16 %v1820_v18, %v1820_v18 }
0x1185   :  { %v1832_v20 = vunpack.c.l.b16 %v1822_v19 }
0x1187   :  { %v1836_v21 = vsel %vm1835_vm6, %v1834_v10, %v1832_v20 }
0x1188   :  { %v1837_v22 = vpack.c.b16 %v1836_v21, %v1836_v21 }
0x118a   :  { %2092 = vmatmul.msk.bf16.vlgmr.msra.gmra.mxu2 %vm47_vm0, %v1837_v22 }
0x120d   :  { %v1862_v25 = vpop.f32.mrf.mxu2 }
0x120e   :  { %v1863_v26 = vadd.f32 %v2217_v24, %v1862_v25 }
0x1210   :  { %2313 = vtanh.f32 %v1863_v26 }
0x1215   :  { %v1864_v27 = vpop.f32.mrf.mxu2 }
0x1216   :  { %v2314_v28 = vpop.eup %2313 }
0x1217   :  { %v1867_v29 = vpack.c.bf16 %v2314_v28, %v2314_v28 }
0x1219   :  { %2101 = vmatmul.msk.bf16.vlgmr.msra.gmra.mxu0 %vm47_vm0, %v1867_v29 }
0x1296   :  { %v1898_v30 = vpop.f32.mrf.mxu0 }
0x1297   :  { %v1899_v31 = vadd.f32 %v2218_v8, %v1898_v30 }
0x1299   :  { %1903 = vst.msk [vmem:[#allocation2] sm:$0x3] %vm1902_vm7, %v1899_v31 }
0x129a   :  { %1914 = dma.vmem_to_hbm [thread:$0]  %s1910_s27, 32, %s1912_s3, [#allocation3]  }
0x129e   :  { %v1900_v32 = vpop.f32.mrf.mxu0 }
0x129f   :  { %2339 = dma.done.wait [#allocation3], 32  }
0x12a0   :  { %2340 = vsyncadd [#allocation3], 4294967264 }
0x12a1   :  { %1919 = vsyncpa [#allocation3], 1 }

</bundles_post_ra>
